<compile_context>
chip_gen: v7x
topology: tpu7x:2x2x1
jax: 0.10.0
libtpu: 0.0.40
codegen_flags: <defaults>
</compile_context>

<pallas_src>
import numpy as np

import jax
import jax.numpy as jnp
from jax.experimental import pallas as pl
from jax.experimental.pallas import tpu as pltpu


def _round_up(n, m):
    return ((n + m - 1) // m) * m


def _softplus(x):
    # numerically stable softplus, same semantics as torch.nn.functional.softplus
    return jnp.logaddexp(x, 0.0)


def _cond_mlp_kernel(x_ref, g_ref,
                     w1_ref, b1_ref, w2_ref, b2_ref,
                     w3_ref, b3_ref, w4_ref, b4_ref,
                     valid_ref, gind_ref, gindt_ref,
                     out_ref):
    f32 = jnp.float32
    bf16 = jnp.bfloat16

    x = x_ref[...]                        # [Bb, I_pad] bf16
    gam = g_ref[...]                      # [Bb, 3*H_pad] f32 (pre-gathered gammas)
    h_pad = b1_ref.shape[1]
    g1 = gam[:, 0:h_pad]
    g2 = gam[:, h_pad:2 * h_pad]
    g3 = gam[:, 2 * h_pad:3 * h_pad]

    # ---- conditional MLP: bf16 MXU operands, f32 accumulation & elementwise ----
    h = jnp.dot(x, w1_ref[...], preferred_element_type=f32) + b1_ref[...]
    h = _softplus(g1 * h)
    h = jnp.dot(h.astype(bf16), w2_ref[...], preferred_element_type=f32) + b2_ref[...]
    h = _softplus(g2 * h)
    h = jnp.dot(h.astype(bf16), w3_ref[...], preferred_element_type=f32) + b3_ref[...]
    h = _softplus(g3 * h)
    logits = jnp.dot(h.astype(bf16), w4_ref[...],
                     preferred_element_type=f32) + b4_ref[...]          # [Bb, I_pad]

    # ---- per-feature-group softmax ----
    # Softmax is shift-invariant within each group, so a single masked row max
    # replaces the O(n_groups) per-group-max loop; the epsilon guard below covers
    # the (pathological) case of a whole group underflowing.
    valid = valid_ref[...]                # [1, I_pad] f32, 1.0 real lane / 0.0 padding
    m = jnp.max(jnp.where(valid > 0, logits, f32(-1e30)), axis=1, keepdims=True)
    e = jnp.exp(logits - m) * valid       # padding lanes -> 0

    # per-group sums via a skinny bf16 indicator matmul, broadcast back via its
    # transpose (both MXU; O(B*I*G) instead of O(B*I^2)).
    group_sums = jnp.dot(e.astype(bf16), gind_ref[...],
                         preferred_element_type=f32)                    # [Bb, G_pad]
    denom = jnp.dot(group_sums.astype(bf16), gindt_ref[...],
                    preferred_element_type=f32)                         # [Bb, I_pad]
    denom = denom + (1.0 - valid) + f32(1e-30)   # padding lanes -> 1; underflow guard
    out_ref[...] = (e / denom).astype(out_ref.dtype)


def pack_params(params, feature_indices, *, lane=128):
    """Pad / cast / pre-pack parameters ONCE (hoist out of the training step).

    lane: feature/hidden padding multiple (128 min; 256 can help on v6e's 256-wide MXU).
    """
    input_size = params["w1"].shape[0]
    hidden_size = params["w1"].shape[1]
    n_steps = params["embed1"].shape[0]

    fi = tuple((int(s), int(e)) for s, e in feature_indices)
    assert fi[0][0] == 0 and fi[-1][1] == input_size, "groups must cover [0, input_size)"
    for (_, e0), (s1, _) in zip(fi[:-1], fi[1:]):
        assert e0 == s1, "feature_indices must contiguously tile [0, input_size)"
    n_groups = len(fi)

    i_pad = _round_up(input_size, lane)
    h_pad = _round_up(hidden_size, lane)
    g_pad = _round_up(n_groups, 128)

    f32, bf16 = jnp.float32, jnp.bfloat16

    def pad2(a, rows, cols, dtype):
        a = jnp.asarray(a).astype(dtype)
        return jnp.pad(a, ((0, rows - a.shape[0]), (0, cols - a.shape[1])))

    w1 = pad2(params["w1"], i_pad, h_pad, bf16)
    w2 = pad2(params["w2"], h_pad, h_pad, bf16)
    w3 = pad2(params["w3"], h_pad, h_pad, bf16)
    w4 = pad2(params["w4"], h_pad, i_pad, bf16)
    b1 = pad2(params["b1"].reshape(1, -1), 1, h_pad, f32)
    b2 = pad2(params["b2"].reshape(1, -1), 1, h_pad, f32)
    b3 = pad2(params["b3"].reshape(1, -1), 1, h_pad, f32)
    b4 = pad2(params["b4"].reshape(1, -1), 1, i_pad, f32)

    # Embedding tables stay in HBM / XLA; only the gathered [B, 3*H_pad] rows reach VMEM.
    embed_all = jnp.concatenate(
        [pad2(params["embed1"], n_steps, h_pad, f32),
         pad2(params["embed2"], n_steps, h_pad, f32),
         pad2(params["embed3"], n_steps, h_pad, f32)], axis=1)          # [n_steps, 3*H_pad]

    # static softmax-group constants
    gid_np = np.full((i_pad,), -1, dtype=np.int32)
    for g, (s, e) in enumerate(fi):
        gid_np[s:e] = g
    valid_row = jnp.asarray((gid_np >= 0).astype(np.float32)).reshape(1, i_pad)
    gind_np = np.zeros((i_pad, g_pad), dtype=np.float32)
    for g, (s, e) in enumerate(fi):
        gind_np[s:e, g] = 1.0
    gind = jnp.asarray(gind_np, dtype=bf16)          # [I_pad, G_pad]
    gind_t = jnp.asarray(gind_np.T, dtype=bf16)      # [G_pad, I_pad]

    return dict(w1=w1, b1=b1, w2=w2, b2=b2, w3=w3, b3=b3, w4=w4, b4=b4,
                embed_all=embed_all, valid_row=valid_row, gind=gind, gind_t=gind_t,
                meta=dict(input_size=input_size, hidden_size=hidden_size,
                          i_pad=i_pad, h_pad=h_pad, g_pad=g_pad, n_groups=n_groups))


def conditional_multinomial_forward(x, y, packed, *, block_b=256,
                                    out_dtype=jnp.float32):
    """Forward pass matching ConditionalMultinomialModel.forward.

    x: [B, input_size] float32; y: [B] int32 timesteps; packed: pack_params() output.
    """
    meta = packed["meta"]
    input_size = meta["input_size"]
    i_pad, h_pad, g_pad = meta["i_pad"], meta["h_pad"], meta["g_pad"]
    B = x.shape[0]
    f32, bf16 = jnp.float32, jnp.bfloat16

    # batch blocking: prefer >=2 grid steps so v7x can split the batch across its 2 TCs
    b8 = _round_up(B, 8)
    block_B = _round_up(min(block_b, b8), 8)
    if b8 >= 16 and b8 // block_B < 2:
        block_B = _round_up((b8 + 1) // 2, 8)
    b_pad = _round_up(b8, block_B)
    grid = (b_pad // block_B,)

    # activations (per-call)
    x_p = jnp.pad(x.astype(bf16), ((0, b_pad - B), (0, i_pad - input_size)))
    gammas = packed["embed_all"][y.astype(jnp.int32)]        # exact f32 gather, [B, 3*H_pad]
    g_p = jnp.pad(gammas, ((0, b_pad - B), (0, 0)))

    batch_inputs = (x_p, g_p)
    const_inputs = (packed["w1"], packed["b1"], packed["w2"], packed["b2"],
                    packed["w3"], packed["b3"], packed["w4"], packed["b4"],
                    packed["valid_row"], packed["gind"], packed["gind_t"])
    inputs = batch_inputs + const_inputs

    # explicit VMEM budget: single-buffered constants + double-buffered batch blocks
    const_bytes = sum(int(np.prod(a.shape)) * a.dtype.itemsize for a in const_inputs)
    block_bytes = block_B * (i_pad * 2 + 3 * h_pad * 4
                             + i_pad * jnp.dtype(out_dtype).itemsize)
    vmem_limit_bytes = int(min(48 << 20,                     # fits v7x's 64 MiB physical
                               max(32 << 20,
                                   int(1.4 * (const_bytes + 3 * block_bytes)))))

    flops = 2 * b_pad * (i_pad * h_pad + 2 * h_pad * h_pad + h_pad * i_pad
                         + 2 * i_pad * g_pad)
    transcendentals = b_pad * (6 * h_pad + i_pad)
    bytes_accessed = int(sum(int(np.prod(a.shape)) * a.dtype.itemsize for a in inputs)
                         + b_pad * i_pad * jnp.dtype(out_dtype).itemsize)

    out_shape = jax.ShapeDtypeStruct((b_pad, i_pad), out_dtype)

    def batch_spec(shape):
        return pl.BlockSpec(shape, lambda i: (i, 0))

    def run(single_buffer_consts):
        if single_buffer_consts:
            def const_spec(shape):
                # constant index_map -> a second buffer would never be used
                return pl.BlockSpec(shape, lambda i: (0, 0),
                                    pipeline_mode=pl.Buffered(1))
        else:
            def const_spec(shape):
                return pl.BlockSpec(shape, lambda i: (0, 0))

        in_specs = [
            batch_spec((block_B, i_pad)),                      # x
            batch_spec((block_B, 3 * h_pad)),                  # pre-gathered gammas
            const_spec((i_pad, h_pad)), const_spec((1, h_pad)),   # w1, b1
            const_spec((h_pad, h_pad)), const_spec((1, h_pad)),   # w2, b2
            const_spec((h_pad, h_pad)), const_spec((1, h_pad)),   # w3, b3
            const_spec((h_pad, i_pad)), const_spec((1, i_pad)),   # w4, b4
            const_spec((1, i_pad)),                            # valid-lane row
            const_spec((i_pad, g_pad)),                        # group indicator
            const_spec((g_pad, i_pad)),                        # group indicator (transposed)
        ]
        return pl.pallas_call(
            _cond_mlp_kernel,
            out_shape=out_shape,
            grid_spec=pltpu.PrefetchScalarGridSpec(
                num_scalar_prefetch=0,
                grid=grid,
                in_specs=in_specs,
                out_specs=batch_spec((block_B, i_pad)),
            ),
            compiler_params=pltpu.CompilerParams(
                dimension_semantics=("parallel",),
                vmem_limit_bytes=vmem_limit_bytes,
            ),
            cost_estimate=pl.CostEstimate(
                flops=flops,
                transcendentals=transcendentals,
                bytes_accessed=bytes_accessed,
            ),
        )(*inputs)

    try:
        out = run(True)
    except Exception:
        # Fallback if this JAX build rejects pipeline_mode=pl.Buffered(1):
        # identical semantics, default double-buffered constants.
        out = run(False)

    return out[:B, :input_size]


def init_params(key, n_steps, hidden_size, input_size):
    """Deterministic parameter init mimicking PyTorch defaults.

    nn.Linear: W, b ~ U(-1/sqrt(fan_in), 1/sqrt(fan_in));
    nn.Embedding (after .uniform_()): U(0, 1).
    Weights are stored as [in, out] (pre-transposed for x @ W); biases as [1, out].
    """
    ks = jax.random.split(key, 11)

    def linear(kw, kb, fan_in, fan_out):
        bound = 1.0 / jnp.sqrt(jnp.float32(fan_in))
        w = jax.random.uniform(kw, (fan_in, fan_out), jnp.float32, -bound, bound)
        b = jax.random.uniform(kb, (1, fan_out), jnp.float32, -bound, bound)
        return w, b

    w1, b1 = linear(ks[0], ks[1], input_size, hidden_size)
    w2, b2 = linear(ks[2], ks[3], hidden_size, hidden_size)
    w3, b3 = linear(ks[4], ks[5], hidden_size, hidden_size)
    w4, b4 = linear(ks[6], ks[7], hidden_size, input_size)

    embed1 = jax.random.uniform(ks[8], (n_steps, hidden_size), jnp.float32)
    embed2 = jax.random.uniform(ks[9], (n_steps, hidden_size), jnp.float32)
    embed3 = jax.random.uniform(ks[10], (n_steps, hidden_size), jnp.float32)

    return dict(w1=w1, b1=b1, w2=w2, b2=b2, w3=w3, b3=b3, w4=w4, b4=b4,
                embed1=embed1, embed2=embed2, embed3=embed3)


def reference_forward_f32(x, y, feature_indices, params):
    """Exact f32 pure-JAX reference (original module semantics)."""
    g1 = params["embed1"][y]
    g2 = params["embed2"][y]
    g3 = params["embed3"][y]
    h = jax.nn.softplus(g1 * (x @ params["w1"] + params["b1"]))
    h = jax.nn.softplus(g2 * (h @ params["w2"] + params["b2"]))
    h = jax.nn.softplus(g3 * (h @ params["w3"] + params["b3"]))
    logits = h @ params["w4"] + params["b4"]
    return jnp.concatenate([jax.nn.softmax(logits[:, s:e], axis=1)
                            for s, e in feature_indices], axis=1)


def reference_forward_matched(x, y, feature_indices, params):
    """Pure-JAX reference mirroring the kernel numerics (bf16 MXU operands, f32 acc)."""
    bf16 = jnp.bfloat16

    def dot(a, w):
        return jnp.dot(a.astype(bf16), w.astype(bf16),
                       preferred_element_type=jnp.float32)

    g1 = params["embed1"][y]
    g2 = params["embed2"][y]
    g3 = params["embed3"][y]
    h = jax.nn.softplus(g1 * (dot(x, params["w1"]) + params["b1"]))
    h = jax.nn.softplus(g2 * (dot(h, params["w2"]) + params["b2"]))
    h = jax.nn.softplus(g3 * (dot(h, params["w3"]) + params["b3"]))
    logits = dot(h, params["w4"]) + params["b4"]
    return jnp.concatenate([jax.nn.softmax(logits[:, s:e], axis=1)
                            for s, e in feature_indices], axis=1)


if __name__ == "__main__":
    n_steps = 10
    hidden_size = 32
    input_size = 16
    batch = 8
    # discrete feature groups (contiguous, covering [0, input_size))
    feature_indices = ((0, 4), (4, 10), (10, 16))

    key = jax.random.PRNGKey(0)
    k_params, k_x, k_y = jax.random.split(key, 3)

    params = init_params(k_params, n_steps, hidden_size, input_size)
    x = jax.random.normal(k_x, (batch, input_size), jnp.float32)
    y = jax.random.randint(k_y, (batch,), 0, n_steps, jnp.int32)

    packed = pack_params(params, feature_indices)   # hoisted: done once, not per step
    out = conditional_multinomial_forward(x, y, packed)
    out = jax.block_until_ready(out)

    assert out.shape == (batch, input_size)
    assert bool(jnp.all(jnp.isfinite(out)))

    ref_matched = reference_forward_matched(x, y, feature_indices, params)
    ref_exact = reference_forward_f32(x, y, feature_indices, params)

    err_matched = float(jnp.max(jnp.abs(out - ref_matched)))
    err_exact = float(jnp.max(jnp.abs(out - ref_exact)))
    # tight check vs a reference using the same bf16-matmul / f32-acc numerics
    assert err_matched < 2e-2, f"mismatch vs matched reference: {err_matched}"
    # looser sanity check vs the exact f32 module semantics (bf16 MXU rounding)
    assert err_exact < 6e-2, f"mismatch vs exact f32 reference: {err_exact}"

    print("KERNEL_OK")
</pallas_src>

<mosaic_0001>
module attributes {stable_mosaic.version = 11 : i64} {
  func.func @_cond_mlp_kernel(%arg0: i32, %arg1: memref<8x128xbf16, #tpu.memory_space<vmem>>, %arg2: memref<8x384xf32, #tpu.memory_space<vmem>>, %arg3: memref<128x128xbf16, #tpu.memory_space<vmem>>, %arg4: memref<1x128xf32, #tpu.memory_space<vmem>>, %arg5: memref<128x128xbf16, #tpu.memory_space<vmem>>, %arg6: memref<1x128xf32, #tpu.memory_space<vmem>>, %arg7: memref<128x128xbf16, #tpu.memory_space<vmem>>, %arg8: memref<1x128xf32, #tpu.memory_space<vmem>>, %arg9: memref<128x128xbf16, #tpu.memory_space<vmem>>, %arg10: memref<1x128xf32, #tpu.memory_space<vmem>>, %arg11: memref<1x128xf32, #tpu.memory_space<vmem>>, %arg12: memref<128x128xbf16, #tpu.memory_space<vmem>>, %arg13: memref<128x128xbf16, #tpu.memory_space<vmem>>, %arg14: memref<8x128xf32, #tpu.memory_space<vmem>>) attributes {dimension_semantics = [#tpu.dimension_semantics<parallel>], iteration_bounds = array<i64: 1>, scalar_prefetch = 0 : i64, scratch_operands = 0 : i64, tpu.core_type = #tpu.core_type<tc>, window_params = [{transform_indices = @transform_0, window_bounds = array<i64: 8, 128>}, {transform_indices = @transform_1, window_bounds = array<i64: 8, 384>}, {pipeline_mode = #tpu.pipeline_mode<synchronous>, transform_indices = @transform_2, window_bounds = array<i64: 128, 128>}, {pipeline_mode = #tpu.pipeline_mode<synchronous>, transform_indices = @transform_3, window_bounds = array<i64: 1, 128>}, {pipeline_mode = #tpu.pipeline_mode<synchronous>, transform_indices = @transform_4, window_bounds = array<i64: 128, 128>}, {pipeline_mode = #tpu.pipeline_mode<synchronous>, transform_indices = @transform_5, window_bounds = array<i64: 1, 128>}, {pipeline_mode = #tpu.pipeline_mode<synchronous>, transform_indices = @transform_6, window_bounds = array<i64: 128, 128>}, {pipeline_mode = #tpu.pipeline_mode<synchronous>, transform_indices = @transform_7, window_bounds = array<i64: 1, 128>}, {pipeline_mode = #tpu.pipeline_mode<synchronous>, transform_indices = @transform_8, window_bounds = array<i64: 128, 128>}, {pipeline_mode = #tpu.pipeline_mode<synchronous>, transform_indices = @transform_9, window_bounds = array<i64: 1, 128>}, {pipeline_mode = #tpu.pipeline_mode<synchronous>, transform_indices = @transform_10, window_bounds = array<i64: 1, 128>}, {pipeline_mode = #tpu.pipeline_mode<synchronous>, transform_indices = @transform_11, window_bounds = array<i64: 128, 128>}, {pipeline_mode = #tpu.pipeline_mode<synchronous>, transform_indices = @transform_12, window_bounds = array<i64: 128, 128>}, {transform_indices = @transform_13, window_bounds = array<i64: 8, 128>}]} {
    %c0 = arith.constant 0 : index
    %c0_0 = arith.constant 0 : index
    %0 = vector.load %arg1[%c0, %c0_0] : memref<8x128xbf16, #tpu.memory_space<vmem>>, vector<8x128xbf16>
    %c0_1 = arith.constant 0 : index
    %c0_2 = arith.constant 0 : index
    %1 = vector.load %arg2[%c0_1, %c0_2] : memref<8x384xf32, #tpu.memory_space<vmem>>, vector<8x384xf32>
    %2 = vector.extract_strided_slice %1 {offsets = [0, 0], sizes = [8, 128], strides = [1, 1]} : vector<8x384xf32> to vector<8x128xf32>
    %3 = vector.extract_strided_slice %1 {offsets = [0, 128], sizes = [8, 128], strides = [1, 1]} : vector<8x384xf32> to vector<8x128xf32>
    %4 = vector.extract_strided_slice %1 {offsets = [0, 256], sizes = [8, 128], strides = [1, 1]} : vector<8x384xf32> to vector<8x128xf32>
    %c0_3 = arith.constant 0 : index
    %c0_4 = arith.constant 0 : index
    %5 = vector.load %arg3[%c0_3, %c0_4] : memref<128x128xbf16, #tpu.memory_space<vmem>>, vector<128x128xbf16>
    %cst = arith.constant dense<0.000000e+00> : vector<8x128xf32>
    %6 = tpu.matmul %0, %5, %cst {dimension_numbers = #tpu.dot_dimension_numbers<[1], [0], [0], [1], [0, 0, 1, 1], [], []>} : vector<8x128xbf16>, vector<128x128xbf16>, vector<8x128xf32> -> vector<8x128xf32>
    %c0_5 = arith.constant 0 : index
    %c0_6 = arith.constant 0 : index
    %7 = vector.load %arg4[%c0_5, %c0_6] : memref<1x128xf32, #tpu.memory_space<vmem>>, vector<1x128xf32>
    %8 = vector.broadcast %7 : vector<1x128xf32> to vector<8x128xf32>
    %9 = arith.addf %6, %8 : vector<8x128xf32>
    %10 = arith.mulf %2, %9 : vector<8x128xf32>
    %cst_7 = arith.constant 0.000000e+00 : f32
    %11 = vector.broadcast %cst_7 : f32 to vector<8x128xf32>
    %12 = arith.maximumf %10, %11 : vector<8x128xf32>
    %13 = vector.broadcast %cst_7 : f32 to vector<8x128xf32>
    %14 = arith.subf %10, %13 : vector<8x128xf32>
    %15 = arith.cmpf one, %14, %14 : vector<8x128xf32>
    %16 = vector.broadcast %cst_7 : f32 to vector<8x128xf32>
    %17 = arith.addf %10, %16 : vector<8x128xf32>
    %18 = math.absf %14 : vector<8x128xf32>
    %cst_8 = arith.constant 0.000000e+00 : f32
    %19 = vector.broadcast %cst_8 : f32 to vector<8x128xf32>
    %20 = arith.subf %19, %18 : vector<8x128xf32>
    %21 = math.exp %20 : vector<8x128xf32>
    %22 = math.log1p %21 : vector<8x128xf32>
    %23 = arith.addf %12, %22 : vector<8x128xf32>
    %24 = arith.select %15, %17, %23 : vector<8x128xi1>, vector<8x128xf32>
    %25 = arith.truncf %24 : vector<8x128xf32> to vector<8x128xbf16>
    %c0_9 = arith.constant 0 : index
    %c0_10 = arith.constant 0 : index
    %26 = vector.load %arg5[%c0_9, %c0_10] : memref<128x128xbf16, #tpu.memory_space<vmem>>, vector<128x128xbf16>
    %cst_11 = arith.constant dense<0.000000e+00> : vector<8x128xf32>
    %27 = tpu.matmul %25, %26, %cst_11 {dimension_numbers = #tpu.dot_dimension_numbers<[1], [0], [0], [1], [0, 0, 1, 1], [], []>} : vector<8x128xbf16>, vector<128x128xbf16>, vector<8x128xf32> -> vector<8x128xf32>
    %c0_12 = arith.constant 0 : index
    %c0_13 = arith.constant 0 : index
    %28 = vector.load %arg6[%c0_12, %c0_13] : memref<1x128xf32, #tpu.memory_space<vmem>>, vector<1x128xf32>
    %29 = vector.broadcast %28 : vector<1x128xf32> to vector<8x128xf32>
    %30 = arith.addf %27, %29 : vector<8x128xf32>
    %31 = arith.mulf %3, %30 : vector<8x128xf32>
    %cst_14 = arith.constant 0.000000e+00 : f32
    %32 = vector.broadcast %cst_14 : f32 to vector<8x128xf32>
    %33 = arith.maximumf %31, %32 : vector<8x128xf32>
    %34 = vector.broadcast %cst_14 : f32 to vector<8x128xf32>
    %35 = arith.subf %31, %34 : vector<8x128xf32>
    %36 = arith.cmpf one, %35, %35 : vector<8x128xf32>
    %37 = vector.broadcast %cst_14 : f32 to vector<8x128xf32>
    %38 = arith.addf %31, %37 : vector<8x128xf32>
    %39 = math.absf %35 : vector<8x128xf32>
    %cst_15 = arith.constant 0.000000e+00 : f32
    %40 = vector.broadcast %cst_15 : f32 to vector<8x128xf32>
    %41 = arith.subf %40, %39 : vector<8x128xf32>
    %42 = math.exp %41 : vector<8x128xf32>
    %43 = math.log1p %42 : vector<8x128xf32>
    %44 = arith.addf %33, %43 : vector<8x128xf32>
    %45 = arith.select %36, %38, %44 : vector<8x128xi1>, vector<8x128xf32>
    %46 = arith.truncf %45 : vector<8x128xf32> to vector<8x128xbf16>
    %c0_16 = arith.constant 0 : index
    %c0_17 = arith.constant 0 : index
    %47 = vector.load %arg7[%c0_16, %c0_17] : memref<128x128xbf16, #tpu.memory_space<vmem>>, vector<128x128xbf16>
    %cst_18 = arith.constant dense<0.000000e+00> : vector<8x128xf32>
    %48 = tpu.matmul %46, %47, %cst_18 {dimension_numbers = #tpu.dot_dimension_numbers<[1], [0], [0], [1], [0, 0, 1, 1], [], []>} : vector<8x128xbf16>, vector<128x128xbf16>, vector<8x128xf32> -> vector<8x128xf32>
    %c0_19 = arith.constant 0 : index
    %c0_20 = arith.constant 0 : index
    %49 = vector.load %arg8[%c0_19, %c0_20] : memref<1x128xf32, #tpu.memory_space<vmem>>, vector<1x128xf32>
    %50 = vector.broadcast %49 : vector<1x128xf32> to vector<8x128xf32>
    %51 = arith.addf %48, %50 : vector<8x128xf32>
    %52 = arith.mulf %4, %51 : vector<8x128xf32>
    %cst_21 = arith.constant 0.000000e+00 : f32
    %53 = vector.broadcast %cst_21 : f32 to vector<8x128xf32>
    %54 = arith.maximumf %52, %53 : vector<8x128xf32>
    %55 = vector.broadcast %cst_21 : f32 to vector<8x128xf32>
    %56 = arith.subf %52, %55 : vector<8x128xf32>
    %57 = arith.cmpf one, %56, %56 : vector<8x128xf32>
    %58 = vector.broadcast %cst_21 : f32 to vector<8x128xf32>
    %59 = arith.addf %52, %58 : vector<8x128xf32>
    %60 = math.absf %56 : vector<8x128xf32>
    %cst_22 = arith.constant 0.000000e+00 : f32
    %61 = vector.broadcast %cst_22 : f32 to vector<8x128xf32>
    %62 = arith.subf %61, %60 : vector<8x128xf32>
    %63 = math.exp %62 : vector<8x128xf32>
    %64 = math.log1p %63 : vector<8x128xf32>
    %65 = arith.addf %54, %64 : vector<8x128xf32>
    %66 = arith.select %57, %59, %65 : vector<8x128xi1>, vector<8x128xf32>
    %67 = arith.truncf %66 : vector<8x128xf32> to vector<8x128xbf16>
    %c0_23 = arith.constant 0 : index
    %c0_24 = arith.constant 0 : index
    %68 = vector.load %arg9[%c0_23, %c0_24] : memref<128x128xbf16, #tpu.memory_space<vmem>>, vector<128x128xbf16>
    %cst_25 = arith.constant dense<0.000000e+00> : vector<8x128xf32>
    %69 = tpu.matmul %67, %68, %cst_25 {dimension_numbers = #tpu.dot_dimension_numbers<[1], [0], [0], [1], [0, 0, 1, 1], [], []>} : vector<8x128xbf16>, vector<128x128xbf16>, vector<8x128xf32> -> vector<8x128xf32>
    %c0_26 = arith.constant 0 : index
    %c0_27 = arith.constant 0 : index
    %70 = vector.load %arg10[%c0_26, %c0_27] : memref<1x128xf32, #tpu.memory_space<vmem>>, vector<1x128xf32>
    %71 = vector.broadcast %70 : vector<1x128xf32> to vector<8x128xf32>
    %72 = arith.addf %69, %71 : vector<8x128xf32>
    %c0_28 = arith.constant 0 : index
    %c0_29 = arith.constant 0 : index
    %73 = vector.load %arg11[%c0_28, %c0_29] : memref<1x128xf32, #tpu.memory_space<vmem>>, vector<1x128xf32>
    %cst_30 = arith.constant 0.000000e+00 : f32
    %74 = vector.broadcast %cst_30 : f32 to vector<1x128xf32>
    %75 = arith.cmpf ogt, %73, %74 : vector<1x128xf32>
    %cst_31 = arith.constant -1.000000e+30 : f32
    %76 = vector.shape_cast %75 : vector<1x128xi1> to vector<1x128xi1>
    %77 = vector.broadcast %76 : vector<1x128xi1> to vector<8x128xi1>
    %78 = vector.broadcast %cst_31 : f32 to vector<8x128xf32>
    %79 = arith.select %77, %72, %78 : vector<8x128xi1>, vector<8x128xf32>
    %cst_32 = arith.constant dense<0xFF800000> : vector<8xf32>
    %80 = vector.multi_reduction <maximumf>, %79, %cst_32 [1] : vector<8x128xf32> to vector<8xf32>
    %81 = vector.shape_cast %80 : vector<8xf32> to vector<8x1xf32>
    %82 = vector.broadcast %81 : vector<8x1xf32> to vector<8x128xf32>
    %83 = arith.subf %72, %82 : vector<8x128xf32>
    %84 = math.exp %83 : vector<8x128xf32>
    %85 = vector.broadcast %73 : vector<1x128xf32> to vector<8x128xf32>
    %86 = arith.mulf %84, %85 : vector<8x128xf32>
    %87 = arith.truncf %86 : vector<8x128xf32> to vector<8x128xbf16>
    %c0_33 = arith.constant 0 : index
    %c0_34 = arith.constant 0 : index
    %88 = vector.load %arg12[%c0_33, %c0_34] : memref<128x128xbf16, #tpu.memory_space<vmem>>, vector<128x128xbf16>
    %cst_35 = arith.constant dense<0.000000e+00> : vector<8x128xf32>
    %89 = tpu.matmul %87, %88, %cst_35 {dimension_numbers = #tpu.dot_dimension_numbers<[1], [0], [0], [1], [0, 0, 1, 1], [], []>} : vector<8x128xbf16>, vector<128x128xbf16>, vector<8x128xf32> -> vector<8x128xf32>
    %90 = arith.truncf %89 : vector<8x128xf32> to vector<8x128xbf16>
    %c0_36 = arith.constant 0 : index
    %c0_37 = arith.constant 0 : index
    %91 = vector.load %arg13[%c0_36, %c0_37] : memref<128x128xbf16, #tpu.memory_space<vmem>>, vector<128x128xbf16>
    %cst_38 = arith.constant dense<0.000000e+00> : vector<8x128xf32>
    %92 = tpu.matmul %90, %91, %cst_38 {dimension_numbers = #tpu.dot_dimension_numbers<[1], [0], [0], [1], [0, 0, 1, 1], [], []>} : vector<8x128xbf16>, vector<128x128xbf16>, vector<8x128xf32> -> vector<8x128xf32>
    %cst_39 = arith.constant 1.000000e+00 : f32
    %93 = vector.broadcast %cst_39 : f32 to vector<1x128xf32>
    %94 = arith.subf %93, %73 : vector<1x128xf32>
    %95 = vector.broadcast %94 : vector<1x128xf32> to vector<8x128xf32>
    %96 = arith.addf %92, %95 : vector<8x128xf32>
    %cst_40 = arith.constant 1.000000e-30 : f32
    %97 = vector.broadcast %cst_40 : f32 to vector<8x128xf32>
    %98 = arith.addf %96, %97 : vector<8x128xf32>
    %99 = arith.divf %86, %98 : vector<8x128xf32>
    %c0_41 = arith.constant 0 : index
    %c0_42 = arith.constant 0 : index
    %100 = vector.load %arg14[%c0_41, %c0_42] : memref<8x128xf32, #tpu.memory_space<vmem>>, vector<8x128xf32>
    tpu.vector_store %arg14[%c0_41, %c0_42], %99 {strides = array<i32>} : memref<8x128xf32, #tpu.memory_space<vmem>>, vector<8x128xf32>,
    return
  }
  func.func @transform_0(%arg0: i32) -> (i32, i32) {
    %c0_i32 = arith.constant 0 : i32
    %c0_i32_0 = arith.constant 0 : i32
    return %arg0, %c0_i32 : i32, i32
  }
  func.func @transform_1(%arg0: i32) -> (i32, i32) {
    %c0_i32 = arith.constant 0 : i32
    %c0_i32_0 = arith.constant 0 : i32
    return %arg0, %c0_i32 : i32, i32
  }
  func.func @transform_2(%arg0: i32) -> (i32, i32) {
    %c0_i32 = arith.constant 0 : i32
    %c0_i32_0 = arith.constant 0 : i32
    %c0_i32_1 = arith.constant 0 : i32
    return %c0_i32, %c0_i32_0 : i32, i32
  }
  func.func @transform_3(%arg0: i32) -> (i32, i32) {
    %c0_i32 = arith.constant 0 : i32
    %c0_i32_0 = arith.constant 0 : i32
    %c0_i32_1 = arith.constant 0 : i32
    return %c0_i32, %c0_i32_0 : i32, i32
  }
  func.func @transform_4(%arg0: i32) -> (i32, i32) {
    %c0_i32 = arith.constant 0 : i32
    %c0_i32_0 = arith.constant 0 : i32
    %c0_i32_1 = arith.constant 0 : i32
    return %c0_i32, %c0_i32_0 : i32, i32
  }
  func.func @transform_5(%arg0: i32) -> (i32, i32) {
    %c0_i32 = arith.constant 0 : i32
    %c0_i32_0 = arith.constant 0 : i32
    %c0_i32_1 = arith.constant 0 : i32
    return %c0_i32, %c0_i32_0 : i32, i32
  }
  func.func @transform_6(%arg0: i32) -> (i32, i32) {
    %c0_i32 = arith.constant 0 : i32
    %c0_i32_0 = arith.constant 0 : i32
    %c0_i32_1 = arith.constant 0 : i32
    return %c0_i32, %c0_i32_0 : i32, i32
  }
  func.func @transform_7(%arg0: i32) -> (i32, i32) {
    %c0_i32 = arith.constant 0 : i32
    %c0_i32_0 = arith.constant 0 : i32
    %c0_i32_1 = arith.constant 0 : i32
    return %c0_i32, %c0_i32_0 : i32, i32
  }
  func.func @transform_8(%arg0: i32) -> (i32, i32) {
    %c0_i32 = arith.constant 0 : i32
    %c0_i32_0 = arith.constant 0 : i32
    %c0_i32_1 = arith.constant 0 : i32
    return %c0_i32, %c0_i32_0 : i32, i32
  }
  func.func @transform_9(%arg0: i32) -> (i32, i32) {
    %c0_i32 = arith.constant 0 : i32
    %c0_i32_0 = arith.constant 0 : i32
    %c0_i32_1 = arith.constant 0 : i32
    return %c0_i32, %c0_i32_0 : i32, i32
  }
  func.func @transform_10(%arg0: i32) -> (i32, i32) {
    %c0_i32 = arith.constant 0 : i32
    %c0_i32_0 = arith.constant 0 : i32
    %c0_i32_1 = arith.constant 0 : i32
    return %c0_i32, %c0_i32_0 : i32, i32
  }
  func.func @transform_11(%arg0: i32) -> (i32, i32) {
    %c0_i32 = arith.constant 0 : i32
    %c0_i32_0 = arith.constant 0 : i32
    %c0_i32_1 = arith.constant 0 : i32
    return %c0_i32, %c0_i32_0 : i32, i32
  }
  func.func @transform_12(%arg0: i32) -> (i32, i32) {
    %c0_i32 = arith.constant 0 : i32
    %c0_i32_0 = arith.constant 0 : i32
    %c0_i32_1 = arith.constant 0 : i32
    return %c0_i32, %c0_i32_0 : i32, i32
  }
  func.func @transform_13(%arg0: i32) -> (i32, i32) {
    %c0_i32 = arith.constant 0 : i32
    %c0_i32_0 = arith.constant 0 : i32
    return %arg0, %c0_i32 : i32, i32
  }
}

module attributes {stable_mosaic.version = 11 : i64} {
  func.func @_cond_mlp_kernel(%arg0: i32, %arg1: memref<8x128xbf16, #tpu.memory_space<vmem>>, %arg2: memref<8x384xf32, #tpu.memory_space<vmem>>, %arg3: memref<128x128xbf16, #tpu.memory_space<vmem>>, %arg4: memref<1x128xf32, #tpu.memory_space<vmem>>, %arg5: memref<128x128xbf16, #tpu.memory_space<vmem>>, %arg6: memref<1x128xf32, #tpu.memory_space<vmem>>, %arg7: memref<128x128xbf16, #tpu.memory_space<vmem>>, %arg8: memref<1x128xf32, #tpu.memory_space<vmem>>, %arg9: memref<128x128xbf16, #tpu.memory_space<vmem>>, %arg10: memref<1x128xf32, #tpu.memory_space<vmem>>, %arg11: memref<1x128xf32, #tpu.memory_space<vmem>>, %arg12: memref<128x128xbf16, #tpu.memory_space<vmem>>, %arg13: memref<128x128xbf16, #tpu.memory_space<vmem>>, %arg14: memref<8x128xf32, #tpu.memory_space<vmem>>) attributes {dimension_semantics = [#tpu.dimension_semantics<parallel>], iteration_bounds = array<i64: 1>, scalar_prefetch = 0 : i64, scratch_operands = 0 : i64, tpu.core_type = #tpu.core_type<tc>, window_params = [{transform_indices = @transform_0, window_bounds = array<i64: 8, 128>}, {transform_indices = @transform_1, window_bounds = array<i64: 8, 384>}, {pipeline_mode = #tpu.pipeline_mode<synchronous>, transform_indices = @transform_2, window_bounds = array<i64: 128, 128>}, {pipeline_mode = #tpu.pipeline_mode<synchronous>, transform_indices = @transform_3, window_bounds = array<i64: 1, 128>}, {pipeline_mode = #tpu.pipeline_mode<synchronous>, transform_indices = @transform_4, window_bounds = array<i64: 128, 128>}, {pipeline_mode = #tpu.pipeline_mode<synchronous>, transform_indices = @transform_5, window_bounds = array<i64: 1, 128>}, {pipeline_mode = #tpu.pipeline_mode<synchronous>, transform_indices = @transform_6, window_bounds = array<i64: 128, 128>}, {pipeline_mode = #tpu.pipeline_mode<synchronous>, transform_indices = @transform_7, window_bounds = array<i64: 1, 128>}, {pipeline_mode = #tpu.pipeline_mode<synchronous>, transform_indices = @transform_8, window_bounds = array<i64: 128, 128>}, {pipeline_mode = #tpu.pipeline_mode<synchronous>, transform_indices = @transform_9, window_bounds = array<i64: 1, 128>}, {pipeline_mode = #tpu.pipeline_mode<synchronous>, transform_indices = @transform_10, window_bounds = array<i64: 1, 128>}, {pipeline_mode = #tpu.pipeline_mode<synchronous>, transform_indices = @transform_11, window_bounds = array<i64: 128, 128>}, {pipeline_mode = #tpu.pipeline_mode<synchronous>, transform_indices = @transform_12, window_bounds = array<i64: 128, 128>}, {transform_indices = @transform_13, window_bounds = array<i64: 8, 128>}]} {
    %c0 = arith.constant 0 : index
    %c0_0 = arith.constant 0 : index
    %0 = vector.load %arg1[%c0, %c0_0] : memref<8x128xbf16, #tpu.memory_space<vmem>>, vector<8x128xbf16>
    %c0_1 = arith.constant 0 : index
    %c0_2 = arith.constant 0 : index
    %1 = vector.load %arg2[%c0_1, %c0_2] : memref<8x384xf32, #tpu.memory_space<vmem>>, vector<8x384xf32>
    %2 = vector.extract_strided_slice %1 {offsets = [0, 0], sizes = [8, 128], strides = [1, 1]} : vector<8x384xf32> to vector<8x128xf32>
    %3 = vector.extract_strided_slice %1 {offsets = [0, 128], sizes = [8, 128], strides = [1, 1]} : vector<8x384xf32> to vector<8x128xf32>
    %4 = vector.extract_strided_slice %1 {offsets = [0, 256], sizes = [8, 128], strides = [1, 1]} : vector<8x384xf32> to vector<8x128xf32>
    %c0_3 = arith.constant 0 : index
    %c0_4 = arith.constant 0 : index
    %5 = vector.load %arg3[%c0_3, %c0_4] : memref<128x128xbf16, #tpu.memory_space<vmem>>, vector<128x128xbf16>
    %cst = arith.constant dense<0.000000e+00> : vector<8x128xf32>
    %6 = tpu.matmul %0, %5, %cst {dimension_numbers = #tpu.dot_dimension_numbers<[1], [0], [0], [1], [0, 0, 1, 1], [], []>} : vector<8x128xbf16>, vector<128x128xbf16>, vector<8x128xf32> -> vector<8x128xf32>
    %c0_5 = arith.constant 0 : index
    %c0_6 = arith.constant 0 : index
    %7 = vector.load %arg4[%c0_5, %c0_6] : memref<1x128xf32, #tpu.memory_space<vmem>>, vector<1x128xf32>
    %8 = vector.broadcast %7 : vector<1x128xf32> to vector<8x128xf32>
    %9 = arith.addf %6, %8 : vector<8x128xf32>
    %10 = arith.mulf %2, %9 : vector<8x128xf32>
    %cst_7 = arith.constant 0.000000e+00 : f32
    %11 = vector.broadcast %cst_7 : f32 to vector<8x128xf32>
    %12 = arith.maximumf %10, %11 : vector<8x128xf32>
    %13 = vector.broadcast %cst_7 : f32 to vector<8x128xf32>
    %14 = arith.subf %10, %13 : vector<8x128xf32>
    %15 = arith.cmpf one, %14, %14 : vector<8x128xf32>
    %16 = vector.broadcast %cst_7 : f32 to vector<8x128xf32>
    %17 = arith.addf %10, %16 : vector<8x128xf32>
    %18 = math.absf %14 : vector<8x128xf32>
    %cst_8 = arith.constant 0.000000e+00 : f32
    %19 = vector.broadcast %cst_8 : f32 to vector<8x128xf32>
    %20 = arith.subf %19, %18 : vector<8x128xf32>
    %21 = math.exp %20 : vector<8x128xf32>
    %22 = math.log1p %21 : vector<8x128xf32>
    %23 = arith.addf %12, %22 : vector<8x128xf32>
    %24 = arith.select %15, %17, %23 : vector<8x128xi1>, vector<8x128xf32>
    %25 = arith.truncf %24 : vector<8x128xf32> to vector<8x128xbf16>
    %c0_9 = arith.constant 0 : index
    %c0_10 = arith.constant 0 : index
    %26 = vector.load %arg5[%c0_9, %c0_10] : memref<128x128xbf16, #tpu.memory_space<vmem>>, vector<128x128xbf16>
    %cst_11 = arith.constant dense<0.000000e+00> : vector<8x128xf32>
    %27 = tpu.matmul %25, %26, %cst_11 {dimension_numbers = #tpu.dot_dimension_numbers<[1], [0], [0], [1], [0, 0, 1, 1], [], []>} : vector<8x128xbf16>, vector<128x128xbf16>, vector<8x128xf32> -> vector<8x128xf32>
    %c0_12 = arith.constant 0 : index
    %c0_13 = arith.constant 0 : index
    %28 = vector.load %arg6[%c0_12, %c0_13] : memref<1x128xf32, #tpu.memory_space<vmem>>, vector<1x128xf32>
    %29 = vector.broadcast %28 : vector<1x128xf32> to vector<8x128xf32>
    %30 = arith.addf %27, %29 : vector<8x128xf32>
    %31 = arith.mulf %3, %30 : vector<8x128xf32>
    %cst_14 = arith.constant 0.000000e+00 : f32
    %32 = vector.broadcast %cst_14 : f32 to vector<8x128xf32>
    %33 = arith.maximumf %31, %32 : vector<8x128xf32>
    %34 = vector.broadcast %cst_14 : f32 to vector<8x128xf32>
    %35 = arith.subf %31, %34 : vector<8x128xf32>
    %36 = arith.cmpf one, %35, %35 : vector<8x128xf32>
    %37 = vector.broadcast %cst_14 : f32 to vector<8x128xf32>
    %38 = arith.addf %31, %37 : vector<8x128xf32>
    %39 = math.absf %35 : vector<8x128xf32>
    %cst_15 = arith.constant 0.000000e+00 : f32
    %40 = vector.broadcast %cst_15 : f32 to vector<8x128xf32>
    %41 = arith.subf %40, %39 : vector<8x128xf32>
    %42 = math.exp %41 : vector<8x128xf32>
    %43 = math.log1p %42 : vector<8x128xf32>
    %44 = arith.addf %33, %43 : vector<8x128xf32>
    %45 = arith.select %36, %38, %44 : vector<8x128xi1>, vector<8x128xf32>
    %46 = arith.truncf %45 : vector<8x128xf32> to vector<8x128xbf16>
    %c0_16 = arith.constant 0 : index
    %c0_17 = arith.constant 0 : index
    %47 = vector.load %arg7[%c0_16, %c0_17] : memref<128x128xbf16, #tpu.memory_space<vmem>>, vector<128x128xbf16>
    %cst_18 = arith.constant dense<0.000000e+00> : vector<8x128xf32>
    %48 = tpu.matmul %46, %47, %cst_18 {dimension_numbers = #tpu.dot_dimension_numbers<[1], [0], [0], [1], [0, 0, 1, 1], [], []>} : vector<8x128xbf16>, vector<128x128xbf16>, vector<8x128xf32> -> vector<8x128xf32>
    %c0_19 = arith.constant 0 : index
    %c0_20 = arith.constant 0 : index
    %49 = vector.load %arg8[%c0_19, %c0_20] : memref<1x128xf32, #tpu.memory_space<vmem>>, vector<1x128xf32>
    %50 = vector.broadcast %49 : vector<1x128xf32> to vector<8x128xf32>
    %51 = arith.addf %48, %50 : vector<8x128xf32>
    %52 = arith.mulf %4, %51 : vector<8x128xf32>
    %cst_21 = arith.constant 0.000000e+00 : f32
    %53 = vector.broadcast %cst_21 : f32 to vector<8x128xf32>
    %54 = arith.maximumf %52, %53 : vector<8x128xf32>
    %55 = vector.broadcast %cst_21 : f32 to vector<8x128xf32>
    %56 = arith.subf %52, %55 : vector<8x128xf32>
    %57 = arith.cmpf one, %56, %56 : vector<8x128xf32>
    %58 = vector.broadcast %cst_21 : f32 to vector<8x128xf32>
    %59 = arith.addf %52, %58 : vector<8x128xf32>
    %60 = math.absf %56 : vector<8x128xf32>
    %cst_22 = arith.constant 0.000000e+00 : f32
    %61 = vector.broadcast %cst_22 : f32 to vector<8x128xf32>
    %62 = arith.subf %61, %60 : vector<8x128xf32>
    %63 = math.exp %62 : vector<8x128xf32>
    %64 = math.log1p %63 : vector<8x128xf32>
    %65 = arith.addf %54, %64 : vector<8x128xf32>
    %66 = arith.select %57, %59, %65 : vector<8x128xi1>, vector<8x128xf32>
    %67 = arith.truncf %66 : vector<8x128xf32> to vector<8x128xbf16>
    %c0_23 = arith.constant 0 : index
    %c0_24 = arith.constant 0 : index
    %68 = vector.load %arg9[%c0_23, %c0_24] : memref<128x128xbf16, #tpu.memory_space<vmem>>, vector<128x128xbf16>
    %cst_25 = arith.constant dense<0.000000e+00> : vector<8x128xf32>
    %69 = tpu.matmul %67, %68, %cst_25 {dimension_numbers = #tpu.dot_dimension_numbers<[1], [0], [0], [1], [0, 0, 1, 1], [], []>} : vector<8x128xbf16>, vector<128x128xbf16>, vector<8x128xf32> -> vector<8x128xf32>
    %c0_26 = arith.constant 0 : index
    %c0_27 = arith.constant 0 : index
    %70 = vector.load %arg10[%c0_26, %c0_27] : memref<1x128xf32, #tpu.memory_space<vmem>>, vector<1x128xf32>
    %71 = vector.broadcast %70 : vector<1x128xf32> to vector<8x128xf32>
    %72 = arith.addf %69, %71 : vector<8x128xf32>
    %c0_28 = arith.constant 0 : index
    %c0_29 = arith.constant 0 : index
    %73 = vector.load %arg11[%c0_28, %c0_29] : memref<1x128xf32, #tpu.memory_space<vmem>>, vector<1x128xf32>
    %cst_30 = arith.constant 0.000000e+00 : f32
    %74 = vector.broadcast %cst_30 : f32 to vector<1x128xf32>
    %75 = arith.cmpf ogt, %73, %74 : vector<1x128xf32>
    %cst_31 = arith.constant -1.000000e+30 : f32
    %76 = vector.shape_cast %75 : vector<1x128xi1> to vector<1x128xi1>
    %77 = vector.broadcast %76 : vector<1x128xi1> to vector<8x128xi1>
    %78 = vector.broadcast %cst_31 : f32 to vector<8x128xf32>
    %79 = arith.select %77, %72, %78 : vector<8x128xi1>, vector<8x128xf32>
    %cst_32 = arith.constant dense<0xFF800000> : vector<8xf32>
    %80 = vector.multi_reduction <maximumf>, %79, %cst_32 [1] : vector<8x128xf32> to vector<8xf32>
    %81 = vector.shape_cast %80 : vector<8xf32> to vector<8x1xf32>
    %82 = vector.broadcast %81 : vector<8x1xf32> to vector<8x128xf32>
    %83 = arith.subf %72, %82 : vector<8x128xf32>
    %84 = math.exp %83 : vector<8x128xf32>
    %85 = vector.broadcast %73 : vector<1x128xf32> to vector<8x128xf32>
    %86 = arith.mulf %84, %85 : vector<8x128xf32>
    %87 = arith.truncf %86 : vector<8x128xf32> to vector<8x128xbf16>
    %c0_33 = arith.constant 0 : index
    %c0_34 = arith.constant 0 : index
    %88 = vector.load %arg12[%c0_33, %c0_34] : memref<128x128xbf16, #tpu.memory_space<vmem>>, vector<128x128xbf16>
    %cst_35 = arith.constant dense<0.000000e+00> : vector<8x128xf32>
    %89 = tpu.matmul %87, %88, %cst_35 {dimension_numbers = #tpu.dot_dimension_numbers<[1], [0], [0], [1], [0, 0, 1, 1], [], []>} : vector<8x128xbf16>, vector<128x128xbf16>, vector<8x128xf32> -> vector<8x128xf32>
    %90 = arith.truncf %89 : vector<8x128xf32> to vector<8x128xbf16>
    %c0_36 = arith.constant 0 : index
    %c0_37 = arith.constant 0 : index
    %91 = vector.load %arg13[%c0_36, %c0_37] : memref<128x128xbf16, #tpu.memory_space<vmem>>, vector<128x128xbf16>
    %cst_38 = arith.constant dense<0.000000e+00> : vector<8x128xf32>
    %92 = tpu.matmul %90, %91, %cst_38 {dimension_numbers = #tpu.dot_dimension_numbers<[1], [0], [0], [1], [0, 0, 1, 1], [], []>} : vector<8x128xbf16>, vector<128x128xbf16>, vector<8x128xf32> -> vector<8x128xf32>
    %cst_39 = arith.constant 1.000000e+00 : f32
    %93 = vector.broadcast %cst_39 : f32 to vector<1x128xf32>
    %94 = arith.subf %93, %73 : vector<1x128xf32>
    %95 = vector.broadcast %94 : vector<1x128xf32> to vector<8x128xf32>
    %96 = arith.addf %92, %95 : vector<8x128xf32>
    %cst_40 = arith.constant 1.000000e-30 : f32
    %97 = vector.broadcast %cst_40 : f32 to vector<8x128xf32>
    %98 = arith.addf %96, %97 : vector<8x128xf32>
    %99 = arith.divf %86, %98 : vector<8x128xf32>
    %c0_41 = arith.constant 0 : index
    %c0_42 = arith.constant 0 : index
    %100 = vector.load %arg14[%c0_41, %c0_42] : memref<8x128xf32, #tpu.memory_space<vmem>>, vector<8x128xf32>
    tpu.vector_store %arg14[%c0_41, %c0_42], %99 {strides = array<i32>} : memref<8x128xf32, #tpu.memory_space<vmem>>, vector<8x128xf32>,
    return
  }
  func.func @transform_0(%arg0: i32) -> (i32, i32) {
    %c0_i32 = arith.constant 0 : i32
    %c0_i32_0 = arith.constant 0 : i32
    return %arg0, %c0_i32 : i32, i32
  }
  func.func @transform_1(%arg0: i32) -> (i32, i32) {
    %c0_i32 = arith.constant 0 : i32
    %c0_i32_0 = arith.constant 0 : i32
    return %arg0, %c0_i32 : i32, i32
  }
  func.func @transform_2(%arg0: i32) -> (i32, i32) {
    %c0_i32 = arith.constant 0 : i32
    %c0_i32_0 = arith.constant 0 : i32
    %c0_i32_1 = arith.constant 0 : i32
    return %c0_i32, %c0_i32_0 : i32, i32
  }
  func.func @transform_3(%arg0: i32) -> (i32, i32) {
    %c0_i32 = arith.constant 0 : i32
    %c0_i32_0 = arith.constant 0 : i32
    %c0_i32_1 = arith.constant 0 : i32
    return %c0_i32, %c0_i32_0 : i32, i32
  }
  func.func @transform_4(%arg0: i32) -> (i32, i32) {
    %c0_i32 = arith.constant 0 : i32
    %c0_i32_0 = arith.constant 0 : i32
    %c0_i32_1 = arith.constant 0 : i32
    return %c0_i32, %c0_i32_0 : i32, i32
  }
  func.func @transform_5(%arg0: i32) -> (i32, i32) {
    %c0_i32 = arith.constant 0 : i32
    %c0_i32_0 = arith.constant 0 : i32
    %c0_i32_1 = arith.constant 0 : i32
    return %c0_i32, %c0_i32_0 : i32, i32
  }
  func.func @transform_6(%arg0: i32) -> (i32, i32) {
    %c0_i32 = arith.constant 0 : i32
    %c0_i32_0 = arith.constant 0 : i32
    %c0_i32_1 = arith.constant 0 : i32
    return %c0_i32, %c0_i32_0 : i32, i32
  }
  func.func @transform_7(%arg0: i32) -> (i32, i32) {
    %c0_i32 = arith.constant 0 : i32
    %c0_i32_0 = arith.constant 0 : i32
    %c0_i32_1 = arith.constant 0 : i32
    return %c0_i32, %c0_i32_0 : i32, i32
  }
  func.func @transform_8(%arg0: i32) -> (i32, i32) {
    %c0_i32 = arith.constant 0 : i32
    %c0_i32_0 = arith.constant 0 : i32
    %c0_i32_1 = arith.constant 0 : i32
    return %c0_i32, %c0_i32_0 : i32, i32
  }
  func.func @transform_9(%arg0: i32) -> (i32, i32) {
    %c0_i32 = arith.constant 0 : i32
    %c0_i32_0 = arith.constant 0 : i32
    %c0_i32_1 = arith.constant 0 : i32
    return %c0_i32, %c0_i32_0 : i32, i32
  }
  func.func @transform_10(%arg0: i32) -> (i32, i32) {
    %c0_i32 = arith.constant 0 : i32
    %c0_i32_0 = arith.constant 0 : i32
    %c0_i32_1 = arith.constant 0 : i32
    return %c0_i32, %c0_i32_0 : i32, i32
  }
  func.func @transform_11(%arg0: i32) -> (i32, i32) {
    %c0_i32 = arith.constant 0 : i32
    %c0_i32_0 = arith.constant 0 : i32
    %c0_i32_1 = arith.constant 0 : i32
    return %c0_i32, %c0_i32_0 : i32, i32
  }
  func.func @transform_12(%arg0: i32) -> (i32, i32) {
    %c0_i32 = arith.constant 0 : i32
    %c0_i32_0 = arith.constant 0 : i32
    %c0_i32_1 = arith.constant 0 : i32
    return %c0_i32, %c0_i32_0 : i32, i32
  }
  func.func @transform_13(%arg0: i32) -> (i32, i32) {
    %c0_i32 = arith.constant 0 : i32
    %c0_i32_0 = arith.constant 0 : i32
    return %arg0, %c0_i32 : i32, i32
  }
}

</mosaic_0001>

<bundles_post_ra>
// kernel: tpu_custom_call.1
= control target key start
LH: loop header
LB: loop body
LE: loop exit
PB: predicated region body
PF: predicated region fallthrough
CT: control target
= control target key end

     0   :  { %18 = vsyncpa [#allocation3], 0  ;;  %s1729_s0 = inlined_call_operand.hbm [shape: bf16[8,128], index: 0, kind: input, shape index: {}]   ;;  %s1730_s1 = inlined_call_operand.hbm [shape: f32[8,384], index: 1, kind: input, shape index: {}]   ;;  %s1731_s2 = inlined_call_operand.hbm [shape: bf16[128,128], index: 2, kind: input, shape index: {}]   ;;  %s1732_s3 = inlined_call_operand.vmem [shape: f32[1,128], index: 3, kind: input, shape index: {}]   ;;  %s1733_s4 = inlined_call_operand.hbm [shape: bf16[128,128], index: 4, kind: input, shape index: {}]   ;;  %s1734_s5 = inlined_call_operand.vmem [shape: f32[1,128], index: 5, kind: input, shape index: {}]   ;;  %s1735_s6 = inlined_call_operand.hbm [shape: bf16[128,128], index: 6, kind: input, shape index: {}]   ;;  %s1736_s7 = inlined_call_operand.vmem [shape: f32[1,128], index: 7, kind: input, shape index: {}]   ;;  %s1737_s8 = inlined_call_operand.hbm [shape: bf16[128,128], index: 8, kind: input, shape index: {}]   ;;  %s1738_s9 = inlined_call_operand.vmem [shape: f32[1,128], index: 9, kind: input, shape index: {}]   ;;  %s1739_s10 = inlined_call_operand.vmem [shape: f32[1,128], index: 10, kind: input, shape index: {}]   ;;  %s1740_s11 = inlined_call_operand.hbm [shape: bf16[128,128], index: 11, kind: input, shape index: {}]   ;;  %s1741_s12 = inlined_call_operand.hbm [shape: bf16[128,128], index: 12, kind: input, shape index: {}]   ;;  %s1742_s13 = inlined_call_operand.hbm [shape: f32[8,128], index: 13, kind: output, shape index: {}]  }
   0x1   :  { %19 = vsyncpa [#allocation6], 0 }
   0x2   :  { %20 = vsyncpa [#allocation9], 0 }
   0x3   :  { %21 = vsyncpa [#allocation12], 0 }
   0x4   :  { %22 = vsyncpa [#allocation15], 0 }
   0x5   :  { %23 = vsyncpa [#allocation4], 0  ;;  %s1434_s25 = smov [#allocation5]   ;;  %s1224_s29 = scalar_lea.hbm %s1730_s1, 384 }
   0x6   :  { %s40_s26 = sshll.u32 %s1434_s25, 4  ;;  %p1225_p0 = scmp.ne.s32.totalorder %s1730_s1, %s1224_s29  ;;  %s41_s26 = int_to_ptr.vmem [resolvable:$true] %s40_s26 }
   0x7   :  { %p1228_p1 = scmp.lt.u32.totalorder %s1224_s29, %s1730_s1 }
   0x9   :  { %p1230_p2 = pnand %p1228_p1, %p1225_p0 }
   0xb   :  { %1233 = shalt.err (!%p1230_p2)
}
   0xc   :  { %s1234_s17 = scalar_lea.vmem %s41_s26, 384  ;;  %p1239_p4 = scmp.lt.s32.totalorder %s41_s26, %s41_s26 }
   0xd   :  { %p1235_p3 = scmp.ne.s32.totalorder %s41_s26, %s1234_s17  ;;  %p1240_p5 = scmp.lt.s32.totalorder %s1234_s17, %s1234_s17 }
   0xf   :  { %p1241_p6 = por %p1240_p5, %p1239_p4 }
  0x11   :  { %p1242_p7 = pnand %p1241_p6, %p1235_p3 }
  0x13   :  { %1245 = shalt.err (!%p1242_p7)
}
  0x14   :  { %43 = dma.hbm_to_vmem [thread:$0]  %s1730_s1, 384, %s41_s26, [#allocation6]  }
  0x15   :  { %s1435_s20 = smov [#allocation8]   ;;  %s1436_s22 = smov [#allocation11]  }
  0x16   :  { %s63_s21 = sshll.u32 %s1435_s20, 4  ;;  %s91_s23 = sshll.u32 %s1436_s22, 4  ;;  %s64_s21 = int_to_ptr.vmem [resolvable:$true] %s63_s21  ;;  %s92_s23 = int_to_ptr.vmem [resolvable:$true] %s91_s23 }
  0x17   :  { %s1246_s27 = scalar_lea.hbm %s1733_s4, 1024 }
  0x18   :  { %p1247_p8 = scmp.ne.s32.totalorder %s1733_s4, %s1246_s27  ;;  %p1250_p9 = scmp.lt.u32.totalorder %s1246_s27, %s1733_s4 }
  0x1a   :  { %p1252_p10 = pnand %p1250_p9, %p1247_p8 }
  0x1c   :  { %1255 = shalt.err (!%p1252_p10)
}
  0x1d   :  { %s1256_s1 = scalar_lea.vmem %s64_s21, 1024  ;;  %p1261_p12 = scmp.lt.s32.totalorder %s64_s21, %s64_s21 }
  0x1e   :  { %p1257_p11 = scmp.ne.s32.totalorder %s64_s21, %s1256_s1  ;;  %p1262_p13 = scmp.lt.s32.totalorder %s1256_s1, %s1256_s1 }
  0x20   :  { %p1263_p0 = por %p1262_p13, %p1261_p12 }
  0x22   :  { %p1264_p1 = pnand %p1263_p0, %p1257_p11 }
  0x24   :  { %1267 = shalt.err (!%p1264_p1)
}
  0x25   :  { %s1437_s26 = smov 64   ;;  %s1438_s15 = smov 4  }
  0x26   :  { %69 = dma.hbm_to_vmem [thread:$0]  %s1733_s4, 1024, %s64_s21, [#allocation9], %s1437_s26, %s1437_s26, %s1438_s15  }
  0x27   :  { %s1268_s20 = scalar_lea.hbm %s1737_s8, 1024 }
  0x28   :  { %p1269_p2 = scmp.ne.s32.totalorder %s1737_s8, %s1268_s20  ;;  %p1272_p3 = scmp.lt.u32.totalorder %s1268_s20, %s1737_s8 }
  0x2a   :  { %p1274_p4 = pnand %p1272_p3, %p1269_p2 }
  0x2c   :  { %1277 = shalt.err (!%p1274_p4)
}
  0x2d   :  { %s1278_s28 = scalar_lea.vmem %s92_s23, 1024  ;;  %p1283_p6 = scmp.lt.s32.totalorder %s92_s23, %s92_s23 }
  0x2e   :  { %p1279_p5 = scmp.ne.s32.totalorder %s92_s23, %s1278_s28  ;;  %p1284_p7 = scmp.lt.s32.totalorder %s1278_s28, %s1278_s28 }
  0x30   :  { %p1285_p8 = por %p1284_p7, %p1283_p6 }
  0x32   :  { %p1286_p9 = pnand %p1285_p8, %p1279_p5 }
  0x34   :  { %1289 = shalt.err (!%p1286_p9)
}
  0x35   :  { %97 = dma.hbm_to_vmem [thread:$0]  %s1737_s8, 1024, %s92_s23, [#allocation12], %s1437_s26, %s1437_s26, %s1438_s15  }
  0x36   :  { %s1439_s29 = smov [#allocation2]   ;;  %s1440_s14 = smov [#allocation7]  }
  0x37   :  { %s30_s30 = sshll.u32 %s1439_s29, 4  ;;  %s49_s1 = sshll.u32 %s1440_s14, 4  ;;  %s31_s30 = int_to_ptr.vmem [resolvable:$true] %s30_s30  ;;  %s50_s1 = int_to_ptr.vmem [resolvable:$true] %s49_s1 }
  0x38   :  { %s1290_s18 = scalar_lea.hbm %s1729_s0, 64 }
  0x39   :  { %p1291_p10 = scmp.ne.s32.totalorder %s1729_s0, %s1290_s18  ;;  %p1294_p11 = scmp.lt.u32.totalorder %s1290_s18, %s1729_s0 }
  0x3b   :  { %p1296_p12 = pnand %p1294_p11, %p1291_p10 }
  0x3d   :  { %1299 = shalt.err (!%p1296_p12)
}
  0x3e   :  { %s1300_s8 = scalar_lea.vmem %s31_s30, 64  ;;  %p1305_p0 = scmp.lt.s32.totalorder %s31_s30, %s31_s30 }
  0x3f   :  { %p1301_p13 = scmp.ne.s32.totalorder %s31_s30, %s1300_s8  ;;  %p1306_p1 = scmp.lt.s32.totalorder %s1300_s8, %s1300_s8 }
  0x41   :  { %p1307_p2 = por %p1306_p1, %p1305_p0 }
  0x43   :  { %p1308_p3 = pnand %p1307_p2, %p1301_p13 }
  0x45   :  { %1311 = shalt.err (!%p1308_p3)
}
  0x46   :  { %33 = dma.hbm_to_vmem [thread:$0]  %s1729_s0, 64, %s31_s30, [#allocation3]  }
  0x47   :  { %s1312_s4 = scalar_lea.hbm %s1731_s2, 1024 }
  0x48   :  { %p1313_p4 = scmp.ne.s32.totalorder %s1731_s2, %s1312_s4  ;;  %p1316_p5 = scmp.lt.u32.totalorder %s1312_s4, %s1731_s2 }
  0x4a   :  { %p1318_p6 = pnand %p1316_p5, %p1313_p4 }
  0x4c   :  { %1321 = shalt.err (!%p1318_p6)
}
  0x4d   :  { %s1322_s17 = scalar_lea.vmem %s50_s1, 1024  ;;  %p1327_p8 = scmp.lt.s32.totalorder %s50_s1, %s50_s1 }
  0x4e   :  { %p1323_p7 = scmp.ne.s32.totalorder %s50_s1, %s1322_s17  ;;  %p1328_p9 = scmp.lt.s32.totalorder %s1322_s17, %s1322_s17 }
  0x50   :  { %p1329_p10 = por %p1328_p9, %p1327_p8 }
  0x52   :  { %p1330_p11 = pnand %p1329_p10, %p1323_p7 }
  0x54   :  { %1333 = shalt.err (!%p1330_p11)
}
  0x55   :  { %55 = dma.hbm_to_vmem [thread:$0]  %s1731_s2, 1024, %s50_s1, [#allocation6], %s1437_s26, %s1437_s26, %s1438_s15  }
  0x56   :  { %s1441_s18 = smov [#allocation10]   ;;  %s1442_s20 = smov [#allocation13]  }
  0x57   :  { %s77_s19 = sshll.u32 %s1441_s18, 4  ;;  %s107_s22 = sshll.u32 %s1442_s20, 4  ;;  %s78_s19 = int_to_ptr.vmem [resolvable:$true] %s77_s19  ;;  %s108_s22 = int_to_ptr.vmem [resolvable:$true] %s107_s22 }
  0x58   :  { %s1334_s23 = scalar_lea.hbm %s1735_s6, 1024 }
  0x59   :  { %p1335_p12 = scmp.ne.s32.totalorder %s1735_s6, %s1334_s23  ;;  %p1338_p13 = scmp.lt.u32.totalorder %s1334_s23, %s1735_s6 }
  0x5b   :  { %p1340_p0 = pnand %p1338_p13, %p1335_p12 }
  0x5d   :  { %1343 = shalt.err (!%p1340_p0)
}
  0x5e   :  { %s1344_s2 = scalar_lea.vmem %s78_s19, 1024  ;;  %p1349_p2 = scmp.lt.s32.totalorder %s78_s19, %s78_s19 }
  0x5f   :  { %p1345_p1 = scmp.ne.s32.totalorder %s78_s19, %s1344_s2  ;;  %p1350_p3 = scmp.lt.s32.totalorder %s1344_s2, %s1344_s2 }
  0x61   :  { %p1351_p4 = por %p1350_p3, %p1349_p2 }
  0x63   :  { %p1352_p5 = pnand %p1351_p4, %p1345_p1 }
  0x65   :  { %1355 = shalt.err (!%p1352_p5)
}
  0x66   :  { %83 = dma.hbm_to_vmem [thread:$0]  %s1735_s6, 1024, %s78_s19, [#allocation9], %s1437_s26, %s1437_s26, %s1438_s15  }
  0x67   :  { %s1356_s16 = scalar_lea.hbm %s1740_s11, 1024 }
  0x68   :  { %p1357_p6 = scmp.ne.s32.totalorder %s1740_s11, %s1356_s16  ;;  %p1360_p7 = scmp.lt.u32.totalorder %s1356_s16, %s1740_s11 }
  0x6a   :  { %p1362_p8 = pnand %p1360_p7, %p1357_p6 }
  0x6c   :  { %1365 = shalt.err (!%p1362_p8)
}
  0x6d   :  { %s1366_s20 = scalar_lea.vmem %s108_s22, 1024  ;;  %p1371_p10 = scmp.lt.s32.totalorder %s108_s22, %s108_s22 }
  0x6e   :  { %p1367_p9 = scmp.ne.s32.totalorder %s108_s22, %s1366_s20  ;;  %p1372_p11 = scmp.lt.s32.totalorder %s1366_s20, %s1366_s20 }
  0x70   :  { %p1373_p12 = por %p1372_p11, %p1371_p10 }
  0x72   :  { %p1374_p13 = pnand %p1373_p12, %p1367_p9 }
  0x74   :  { %1377 = shalt.err (!%p1374_p13)
}
  0x75   :  { %113 = dma.hbm_to_vmem [thread:$0]  %s1740_s11, 1024, %s108_s22, [#allocation12], %s1437_s26, %s1437_s26, %s1438_s15  }
  0x76   :  { %s1443_s24 = smov [#allocation14]   ;;  %s1378_s27 = scalar_lea.hbm %s1741_s12, 1024 }
  0x77   :  { %s119_s8 = sshll.u32 %s1443_s24, 4  ;;  %p1379_p0 = scmp.ne.s32.totalorder %s1741_s12, %s1378_s27  ;;  %s120_s8 = int_to_ptr.vmem [resolvable:$true] %s119_s8 }
  0x78   :  { %p1382_p1 = scmp.lt.u32.totalorder %s1378_s27, %s1741_s12 }
  0x7a   :  { %p1384_p2 = pnand %p1382_p1, %p1379_p0 }
  0x7c   :  { %1387 = shalt.err (!%p1384_p2)
}
  0x7d   :  { %s1388_s21 = scalar_lea.vmem %s120_s8, 1024  ;;  %p1393_p4 = scmp.lt.s32.totalorder %s120_s8, %s120_s8 }
  0x7e   :  { %p1389_p3 = scmp.ne.s32.totalorder %s120_s8, %s1388_s21  ;;  %p1394_p5 = scmp.lt.s32.totalorder %s1388_s21, %s1388_s21 }
  0x80   :  { %p1395_p6 = por %p1394_p5, %p1393_p4 }
  0x82   :  { %p1396_p7 = pnand %p1395_p6, %p1389_p3 }
  0x84   :  { %1399 = shalt.err (!%p1396_p7)
}
  0x85   :  { %125 = dma.hbm_to_vmem [thread:$0]  %s1741_s12, 1024, %s120_s8, [#allocation15], %s1437_s26, %s1437_s26, %s1438_s15  }
  0x86   :  { %1422 = dma.done.wait [#allocation3], 64  }
  0x87   :  { %1423 = vsyncadd [#allocation3], 4294967232 }
  0x88   :  { %1424 = dma.done.wait [#allocation6], 1408  }
  0x89   :  { %1425 = vsyncadd [#allocation6], 4294965888 }
  0x8a   :  { %1426 = dma.done.wait [#allocation9], 2048  }
  0x8b   :  { %1427 = vsyncadd [#allocation9], 4294965248 }
  0x8c   :  { %1428 = dma.done.wait [#allocation12], 2048  }
  0x8d   :  { %1429 = vsyncadd [#allocation12], 4294965248 }
  0x8e   :  { %1430 = dma.done.wait [#allocation15], 1024  }
  0x8f   :  { %1431 = vsyncadd [#allocation15], 4294966272  ;;  %v1444_v0 = vmov 0.0   ;;  %vm1445_vm0 = vmmov 0   ;;  %v1160_v1 = vld [vmem:[#allocation7] sm:$0xff]   ;;  %v1161_v2 = vld [vmem:[#allocation7 + $0x8] sm:$0xff]  }
  0x90   :  { %1026 = vmatprep.subr.bf16.mxu0 %v1444_v0  ;;  %1042 = vmatprep.mubr.msk.bf16.mxu0 %vm1445_vm0, %v1444_v0  ;;  %v1162_v3 = vld [vmem:[#allocation7 + $0x10] sm:$0xff]   ;;  %v1163_v4 = vld [vmem:[#allocation7 + $0x18] sm:$0xff]   ;;  %v1164_v5 = vld [vmem:[#allocation7 + $0x20] sm:$0xff]  }
  0x91   :  { %1046 = vmatprep.subr.bf16.mxu1 %v1444_v0  ;;  %1062 = vmatprep.mubr.msk.bf16.mxu1 %vm1445_vm0, %v1444_v0  ;;  %v1165_v6 = vld [vmem:[#allocation7 + $0x28] sm:$0xff]   ;;  %v1166_v7 = vld [vmem:[#allocation7 + $0x30] sm:$0xff]   ;;  %v1167_v8 = vld [vmem:[#allocation7 + $0x38] sm:$0xff]  }
  0x92   :  { %1027 = vmatpush3.bf16.msra.mxu0 %v1160_v1  ;;  %v151_v9 = vld [vmem:[#allocation2] sm:$0xf]  ;;  %v1169_v11 = vld [vmem:[#allocation8 + $0x8] sm:$0xff]   ;;  %v1170_v12 = vld [vmem:[#allocation8 + $0x10] sm:$0xff]  }
  0x93   :  { %1028 = vmatprep.subr.bf16.mxu0 %v1444_v0  ;;  %v1168_v10 = vld [vmem:[#allocation8] sm:$0xff]   ;;  %v1171_v13 = vld [vmem:[#allocation8 + $0x18] sm:$0xff]   ;;  %v1173_v15 = vld [vmem:[#allocation8 + $0x28] sm:$0xff]  }
  0x94   :  { %1047 = vmatpush3.bf16.msra.mxu1 %v1168_v10  ;;  %v1172_v14 = vld [vmem:[#allocation8 + $0x20] sm:$0xff]   ;;  %v1174_v16 = vld [vmem:[#allocation8 + $0x30] sm:$0xff]   ;;  %v1175_v17 = vld [vmem:[#allocation8 + $0x38] sm:$0xff]  }
  0x95   :  { %1048 = vmatprep.subr.bf16.mxu1 %v1444_v0  ;;  %v920_v18 = vld [vmem:[%s1732_s3] ss:$0 sm:$0xff]  ;;  %v152_v19 = vld [vmem:[#allocation5] sm:$0xff]  ;;  %v1178_v44 = vld [vmem:[#allocation10 + $0x10] sm:$0xff]  }
  0x96   :  { %1029 = vmatpush3.bf16.msra.mxu0 %v1161_v2  ;;  %v1176_v42 = vld [vmem:[#allocation10] sm:$0xff]   ;;  %v1177_v43 = vld [vmem:[#allocation10 + $0x8] sm:$0xff]   ;;  %v1179_v45 = vld [vmem:[#allocation10 + $0x18] sm:$0xff]  }
  0x97   :  { %1030 = vmatprep.subr.bf16.mxu0 %v1444_v0  ;;  %v1180_v46 = vld [vmem:[#allocation10 + $0x20] sm:$0xff]   ;;  %v1181_v47 = vld [vmem:[#allocation10 + $0x28] sm:$0xff]   ;;  %v1182_v48 = vld [vmem:[#allocation10 + $0x30] sm:$0xff]  }
  0x98   :  { %1049 = vmatpush3.bf16.msra.mxu1 %v1169_v11  ;;  %v1183_v49 = vld [vmem:[#allocation10 + $0x38] sm:$0xff]   ;;  %v929_v50 = vld [vmem:[%s1734_s5] ss:$0 sm:$0xff]  ;;  %v153_v51 = vld [vmem:[#allocation5 + $0x8] sm:$0xff] }
  0x99   :  { %1050 = vmatprep.subr.bf16.mxu1 %v1444_v0  ;;  %v1184_v11 = vld [vmem:[#allocation11] sm:$0xff]  }
  0x9a   :  { %1031 = vmatpush3.bf16.msra.mxu0 %v1162_v3 }
  0x9b   :  { %1032 = vmatprep.subr.bf16.mxu0 %v1444_v0 }
  0x9c   :  { %1051 = vmatpush3.bf16.msra.mxu1 %v1170_v12  ;;  %v1185_v12 = vld [vmem:[#allocation11 + $0x8] sm:$0xff]  }
  0x9d   :  { %1052 = vmatprep.subr.bf16.mxu1 %v1444_v0 }
  0x9e   :  { %1033 = vmatpush3.bf16.msra.mxu0 %v1163_v4 }
  0x9f   :  { %1034 = vmatprep.subr.bf16.mxu0 %v1444_v0 }
  0xa0   :  { %1053 = vmatpush3.bf16.msra.mxu1 %v1171_v13  ;;  %v1186_v13 = vld [vmem:[#allocation11 + $0x10] sm:$0xff]  }
  0xa1   :  { %1054 = vmatprep.subr.bf16.mxu1 %v1444_v0 }
  0xa2   :  { %1035 = vmatpush3.bf16.msra.mxu0 %v1164_v5 }
  0xa3   :  { %1036 = vmatprep.subr.bf16.mxu0 %v1444_v0 }
  0xa4   :  { %1055 = vmatpush3.bf16.msra.mxu1 %v1172_v14  ;;  %v1187_v14 = vld [vmem:[#allocation11 + $0x18] sm:$0xff]  }
  0xa5   :  { %1056 = vmatprep.subr.bf16.mxu1 %v1444_v0 }
  0xa6   :  { %1037 = vmatpush3.bf16.msra.mxu0 %v1165_v6 }
  0xa7   :  { %1038 = vmatprep.subr.bf16.mxu0 %v1444_v0 }
  0xa8   :  { %1057 = vmatpush3.bf16.msra.mxu1 %v1173_v15  ;;  %v1188_v15 = vld [vmem:[#allocation11 + $0x20] sm:$0xff]  }
  0xa9   :  { %1058 = vmatprep.subr.bf16.mxu1 %v1444_v0 }
  0xaa   :  { %1039 = vmatpush3.bf16.msra.mxu0 %v1166_v7 }
  0xab   :  { %1040 = vmatprep.subr.bf16.mxu0 %v1444_v0 }
  0xac   :  { %1059 = vmatpush3.bf16.msra.mxu1 %v1174_v16  ;;  %v1189_v16 = vld [vmem:[#allocation11 + $0x28] sm:$0xff]  }
  0xad   :  { %1060 = vmatprep.subr.bf16.mxu1 %v1444_v0 }
  0xae   :  { %1041 = vmatpush3.bf16.msra.mxu0 %v1167_v8 }
  0xaf   :  { %1066 = vmatprep.subr.bf16.mxu0 %v1444_v0 }
  0xb0   :  { %1061 = vmatpush3.bf16.msra.mxu1 %v1175_v17  ;;  %v1190_v17 = vld [vmem:[#allocation11 + $0x30] sm:$0xff]  }
  0xb1   :  { %1043 = vmatmul.mubr.bf16.vlgmr.msra.gmra.mrb[0].mxu0 %v151_v9  ;;  %1086 = vmatprep.subr.bf16.mxu1 %v1444_v0 }
  0xb2   :  { %1082 = vmatprep.mubr.msk.bf16.mxu0 %vm1445_vm0, %v1444_v0  ;;  %1067 = vmatpush3.bf16.msra.mxu0 %v1176_v42 }
  0xb3   :  { %1068 = vmatprep.subr.bf16.mxu0 %v1444_v0 }
  0xb6   :  { %1069 = vmatpush3.bf16.msra.mxu0 %v1177_v43  ;;  %v1192_v43 = vld [vmem:[#allocation13] sm:$0xff]  }
  0xb7   :  { %1070 = vmatprep.subr.bf16.mxu0 %v1444_v0 }
  0xba   :  { %1071 = vmatpush3.bf16.msra.mxu0 %v1178_v44  ;;  %v1193_v44 = vld [vmem:[#allocation13 + $0x8] sm:$0xff]  }
  0xbb   :  { %1072 = vmatprep.subr.bf16.mxu0 %v1444_v0 }
  0xbe   :  { %1073 = vmatpush3.bf16.msra.mxu0 %v1179_v45  ;;  %v1194_v45 = vld [vmem:[#allocation13 + $0x10] sm:$0xff]  }
  0xbf   :  { %1074 = vmatprep.subr.bf16.mxu0 %v1444_v0 }
  0xc2   :  { %1075 = vmatpush3.bf16.msra.mxu0 %v1180_v46  ;;  %v662_v46 = vlaneseq }
  0xc3   :  { %1076 = vmatprep.subr.bf16.mxu0 %v1444_v0 }
  0xc6   :  { %1077 = vmatpush3.bf16.msra.mxu0 %v1181_v47  ;;  %v1693_v47 = vld [vmem:[%s1739_s10] sm:$0x1] }
  0xc7   :  { %1078 = vmatprep.subr.bf16.mxu0 %v1444_v0  ;;  %vm660_vm7 = vcmp.gt.f32.partialorder %v1693_v47, 0.0 }
  0xca   :  { %1079 = vmatpush3.bf16.msra.mxu0 %v1182_v48  ;;  %v663_v48 = vshrl.u32 %v662_v46, 7 }
  0xcb   :  { %1080 = vmatprep.subr.bf16.mxu0 %v1444_v0 }
  0xce   :  { %1081 = vmatpush3.bf16.msra.mxu0 %v1183_v49  ;;  %v1696_v49 = vsub.s32 0, %v663_v48 }
  0xcf   :  { %1106 = vmatprep.subr.bf16.mxu0 %v1444_v0 }
 0x184   :  { %v260_v20 = vpop.f32.mrb[0].mxu0 }
 0x185   :  { %v261_v21 = vadd.f32 %v920_v18, %v260_v20  ;;  %v1044_v22 = vpop.f32.mrb[1].mxu0  ;;  %v1191_v18 = vld [vmem:[#allocation11 + $0x38] sm:$0xff]  }
 0x186   :  { %v263_v23 = vpop.f32.mrb[2].mxu0  ;;  %v154_v20 = vld [vmem:[#allocation5 + $0x10] sm:$0xff] }
 0x187   :  { %v266_v24 = vmul.f32 %v261_v21, %v152_v19  ;;  %v1045_v25 = vpop.f32.mrb[3].mxu0  ;;  %v938_v19 = vld [vmem:[%s1736_s7] ss:$0 sm:$0xff] }
 0x189   :  { %v270_v26 = vand.u32 2147483647, %v266_v24  ;;  %v267_v37 = vmax.f32 %v266_v24, 0.0  ;;  %vm268_vm2 = vcmp.ne.f32.partialorder %v266_v24, %v266_v24 }
 0x18b   :  { %v271_v27 = vsub.f32 0.0, %v270_v26 }
 0x18d   :  { %v272_v28 = vmul.f32 1.442695, %v271_v27 }
 0x18f   :  { %1208 = vpow2.f32 %v272_v28 }
 0x199   :  { %v1209_v29 = vpop.eup %1208 }
 0x19a   :  { %v274_v30 = vadd.f32 1.0, %v1209_v29  ;;  %v277_v31 = vmul.f32 -0.5, %v1209_v29  ;;  %v280_v33 = vand.u32 2147483647, %v1209_v29 }
 0x19c   :  { %1210 = vlog2.f32 %v274_v30  ;;  %v278_v32 = vadd.f32 1.0, %v277_v31  ;;  %vm281_vm1 = vcmp.lt.f32.partialorder %v280_v33, 0.0004427343 }
 0x19e   :  { %v279_v36 = vmul.f32 %v1209_v29, %v278_v32 }
 0x1a6   :  { %v1211_v34 = vpop.eup %1210 }
 0x1a7   :  { %v276_v35 = vmul.f32 0.6931472, %v1211_v34 }
 0x1a9   :  { %v282_v38 = vsel %vm281_vm1, %v279_v36, %v276_v35 }
 0x1aa   :  { %v283_v39 = vadd.f32 %v282_v38, %v267_v37 }
 0x1ac   :  { %v284_v40 = vsel %vm268_vm2, %v266_v24, %v283_v39 }
 0x1ad   :  { %v285_v41 = vpack.c.bf16 %v284_v40, %v284_v40 }
 0x1af   :  { %1063 = vmatmul.mubr.bf16.vlgmr.msra.gmra.mrb[0].mxu1 %v285_v41 }
 0x1b0   :  { %1102 = vmatprep.mubr.msk.bf16.mxu1 %vm1445_vm0, %v1444_v0  ;;  %1087 = vmatpush3.bf16.msra.mxu1 %v1184_v11 }
 0x1b1   :  { %1088 = vmatprep.subr.bf16.mxu1 %v1444_v0 }
 0x1b4   :  { %1089 = vmatpush3.bf16.msra.mxu1 %v1185_v12  ;;  %v677_v12 = vrot.slane %v1693_v47, %v1696_v49 }
 0x1b5   :  { %1090 = vmatprep.subr.bf16.mxu1 %v1444_v0 }
 0x1b8   :  { %1091 = vmatpush3.bf16.msra.mxu1 %v1186_v13 }
 0x1b9   :  { %1092 = vmatprep.subr.bf16.mxu1 %v1444_v0 }
 0x1bc   :  { %1093 = vmatpush3.bf16.msra.mxu1 %v1187_v14 }
 0x1bd   :  { %1094 = vmatprep.subr.bf16.mxu1 %v1444_v0 }
 0x1c0   :  { %1095 = vmatpush3.bf16.msra.mxu1 %v1188_v15 }
 0x1c1   :  { %1096 = vmatprep.subr.bf16.mxu1 %v1444_v0 }
 0x1c4   :  { %1097 = vmatpush3.bf16.msra.mxu1 %v1189_v16  ;;  %v1207_v16 = vld [vmem:[#allocation14 + $0x38] sm:$0xff]  }
 0x1c5   :  { %1098 = vmatprep.subr.bf16.mxu1 %v1444_v0 }
 0x1c8   :  { %1099 = vmatpush3.bf16.msra.mxu1 %v1190_v17 }
 0x1c9   :  { %1100 = vmatprep.subr.bf16.mxu1 %v1444_v0 }
 0x1cc   :  { %1101 = vmatpush3.bf16.msra.mxu1 %v1191_v18 }
 0x1cd   :  { %1126 = vmatprep.subr.bf16.mxu1 %v1444_v0 }
 0x282   :  { %v391_v52 = vpop.f32.mrb[0].mxu1 }
 0x283   :  { %v392_v53 = vadd.f32 %v929_v50, %v391_v52  ;;  %v1064_v54 = vpop.f32.mrb[1].mxu1  ;;  %v1446_v50 = vmov 0  }
 0x284   :  { %v394_v55 = vpop.f32.mrb[2].mxu1 }
 0x285   :  { %v397_v56 = vmul.f32 %v392_v53, %v153_v51  ;;  %v1065_v57 = vpop.f32.mrb[3].mxu1  ;;  %v661_v51 = vsel %vm660_vm7, 1, %v1446_v50  ;;  %v947_v53 = vld [vmem:[%s1738_s9] ss:$0 sm:$0xff]  ;;  %s1447_s9 = smov [#allocation16]  }
 0x286   :  { %v665_v52 = vrot.slane %v661_v51, %v1696_v49  ;;  %s907_s10 = sshll.u32 %s1447_s9, 4  ;;  %s908_s10 = int_to_ptr.vmem [resolvable:$true] %s907_s10 }
 0x287   :  { %v401_v58 = vand.u32 2147483647, %v397_v56  ;;  %v398_v6 = vmax.f32 %v397_v56, 0.0  ;;  %vm399_vm4 = vcmp.ne.f32.partialorder %v397_v56, %v397_v56  ;;  %s1400_s0 = scalar_lea.vmem %s908_s10, 128  ;;  %p1405_p9 = scmp.lt.s32.totalorder %s908_s10, %s908_s10 }
 0x288   :  { %vm666_vm8 = vcmp.eq.s32.totalorder %v665_v52, 1  ;;  %p1401_p8 = scmp.ne.s32.totalorder %s908_s10, %s1400_s0  ;;  %p1406_p10 = scmp.lt.s32.totalorder %s1400_s0, %s1400_s0 }
 0x289   :  { %v402_v59 = vsub.f32 0.0, %v401_v58 }
 0x28a   :  { %p1407_p11 = por %p1406_p10, %p1405_p9 }
 0x28b   :  { %v403_v60 = vmul.f32 1.442695, %v402_v59 }
 0x28c   :  { %p1408_p12 = pnand %p1407_p11, %p1401_p8 }
 0x28d   :  { %1212 = vpow2.f32 %v403_v60  ;;  %v1195_v60 = vld [vmem:[#allocation13 + $0x18] sm:$0xff]  }
 0x297   :  { %v1213_v61 = vpop.eup %1212 }
 0x298   :  { %v405_v62 = vadd.f32 1.0, %v1213_v61  ;;  %v408_v63 = vmul.f32 -0.5, %v1213_v61  ;;  %v411_v2 = vand.u32 2147483647, %v1213_v61 }
 0x29a   :  { %1214 = vlog2.f32 %v405_v62  ;;  %v409_v1 = vadd.f32 1.0, %v408_v63  ;;  %vm412_vm3 = vcmp.lt.f32.partialorder %v411_v2, 0.0004427343  ;;  %v1197_v62 = vld [vmem:[#allocation13 + $0x28] sm:$0xff]   ;;  %v1198_v63 = vld [vmem:[#allocation13 + $0x30] sm:$0xff]   ;;  %v1200_v2 = vld [vmem:[#allocation14] sm:$0xff]  }
 0x29c   :  { %v410_v5 = vmul.f32 %v1213_v61, %v409_v1  ;;  %v1196_v61 = vld [vmem:[#allocation13 + $0x20] sm:$0xff]   ;;  %v1199_v1 = vld [vmem:[#allocation13 + $0x38] sm:$0xff]  }
 0x2a4   :  { %v1215_v3 = vpop.eup %1214 }
 0x2a5   :  { %v407_v4 = vmul.f32 0.6931472, %v1215_v3  ;;  %v1201_v3 = vld [vmem:[#allocation14 + $0x8] sm:$0xff]  }
 0x2a7   :  { %v413_v7 = vsel %vm412_vm3, %v410_v5, %v407_v4  ;;  %v1202_v4 = vld [vmem:[#allocation14 + $0x10] sm:$0xff]   ;;  %v1203_v5 = vld [vmem:[#allocation14 + $0x18] sm:$0xff]  }
 0x2a8   :  { %v414_v8 = vadd.f32 %v413_v7, %v398_v6  ;;  %v1204_v6 = vld [vmem:[#allocation14 + $0x20] sm:$0xff]   ;;  %v1205_v7 = vld [vmem:[#allocation14 + $0x28] sm:$0xff]  }
 0x2aa   :  { %v415_v9 = vsel %vm399_vm4, %v397_v56, %v414_v8  ;;  %v1206_v8 = vld [vmem:[#allocation14 + $0x30] sm:$0xff]  }
 0x2ab   :  { %v416_v10 = vpack.c.bf16 %v415_v9, %v415_v9 }
 0x2ad   :  { %1083 = vmatmul.mubr.bf16.vlgmr.msra.gmra.mrb[4].mxu0 %v416_v10 }
 0x2ae   :  { %1122 = vmatprep.mubr.msk.bf16.mxu0 %vm1445_vm0, %v1444_v0  ;;  %1107 = vmatpush3.bf16.msra.mxu0 %v1192_v43 }
 0x2af   :  { %1108 = vmatprep.subr.bf16.mxu0 %v1444_v0 }
 0x2b2   :  { %1109 = vmatpush3.bf16.msra.mxu0 %v1193_v44 }
 0x2b3   :  { %1110 = vmatprep.subr.bf16.mxu0 %v1444_v0 }
 0x2b6   :  { %1111 = vmatpush3.bf16.msra.mxu0 %v1194_v45 }
 0x2b7   :  { %1112 = vmatprep.subr.bf16.mxu0 %v1444_v0 }
 0x2ba   :  { %1113 = vmatpush3.bf16.msra.mxu0 %v1195_v60 }
 0x2bb   :  { %1114 = vmatprep.subr.bf16.mxu0 %v1444_v0 }
 0x2be   :  { %1115 = vmatpush3.bf16.msra.mxu0 %v1196_v61 }
 0x2bf   :  { %1116 = vmatprep.subr.bf16.mxu0 %v1444_v0 }
 0x2c2   :  { %1117 = vmatpush3.bf16.msra.mxu0 %v1197_v62 }
 0x2c3   :  { %1118 = vmatprep.subr.bf16.mxu0 %v1444_v0 }
 0x2c6   :  { %1119 = vmatpush3.bf16.msra.mxu0 %v1198_v63 }
 0x2c7   :  { %1120 = vmatprep.subr.bf16.mxu0 %v1444_v0 }
 0x2ca   :  { %1121 = vmatpush3.bf16.msra.mxu0 %v1199_v1 }
 0x380   :  { %v522_v21 = vpop.f32.mrb[4].mxu0 }
 0x381   :  { %v523_v22 = vadd.f32 %v938_v19, %v522_v21  ;;  %v1084_v23 = vpop.f32.mrb[5].mxu0 }
 0x382   :  { %v525_v24 = vpop.f32.mrb[6].mxu0 }
 0x383   :  { %v528_v25 = vmul.f32 %v523_v22, %v154_v20  ;;  %v1085_v26 = vpop.f32.mrb[7].mxu0 }
 0x385   :  { %v532_v27 = vand.u32 2147483647, %v528_v25  ;;  %v529_v38 = vmax.f32 %v528_v25, 0.0  ;;  %vm530_vm6 = vcmp.ne.f32.partialorder %v528_v25, %v528_v25 }
 0x387   :  { %v533_v28 = vsub.f32 0.0, %v532_v27 }
 0x389   :  { %v534_v29 = vmul.f32 1.442695, %v533_v28 }
 0x38b   :  { %1216 = vpow2.f32 %v534_v29 }
 0x395   :  { %v1217_v30 = vpop.eup %1216 }
 0x396   :  { %v536_v31 = vadd.f32 1.0, %v1217_v30  ;;  %v539_v32 = vmul.f32 -0.5, %v1217_v30  ;;  %v542_v34 = vand.u32 2147483647, %v1217_v30 }
 0x398   :  { %1218 = vlog2.f32 %v536_v31  ;;  %v540_v33 = vadd.f32 1.0, %v539_v32  ;;  %vm543_vm5 = vcmp.lt.f32.partialorder %v542_v34, 0.0004427343 }
 0x39a   :  { %v541_v37 = vmul.f32 %v1217_v30, %v540_v33 }
 0x3a2   :  { %v1219_v35 = vpop.eup %1218 }
 0x3a3   :  { %v538_v36 = vmul.f32 0.6931472, %v1219_v35 }
 0x3a5   :  { %v544_v39 = vsel %vm543_vm5, %v541_v37, %v538_v36 }
 0x3a6   :  { %v545_v40 = vadd.f32 %v544_v39, %v529_v38 }
 0x3a8   :  { %v546_v41 = vsel %vm530_vm6, %v528_v25, %v545_v40 }
 0x3a9   :  { %v547_v42 = vpack.c.bf16 %v546_v41, %v546_v41 }
 0x3ab   :  { %1103 = vmatmul.mubr.bf16.vlgmr.msra.gmra.mrb[4].mxu1 %v547_v42 }
 0x3ac   :  { %1142 = vmatprep.mubr.msk.bf16.mxu1 %vm1445_vm0, %v1444_v0  ;;  %1127 = vmatpush3.bf16.msra.mxu1 %v1200_v2 }
 0x3ad   :  { %1128 = vmatprep.subr.bf16.mxu1 %v1444_v0 }
 0x3b0   :  { %1129 = vmatpush3.bf16.msra.mxu1 %v1201_v3 }
 0x3b1   :  { %1130 = vmatprep.subr.bf16.mxu1 %v1444_v0 }
 0x3b4   :  { %1131 = vmatpush3.bf16.msra.mxu1 %v1202_v4 }
 0x3b5   :  { %1132 = vmatprep.subr.bf16.mxu1 %v1444_v0 }
 0x3b8   :  { %1133 = vmatpush3.bf16.msra.mxu1 %v1203_v5 }
 0x3b9   :  { %1134 = vmatprep.subr.bf16.mxu1 %v1444_v0 }
 0x3bc   :  { %1135 = vmatpush3.bf16.msra.mxu1 %v1204_v6 }
 0x3bd   :  { %1136 = vmatprep.subr.bf16.mxu1 %v1444_v0 }
 0x3c0   :  { %1137 = vmatpush3.bf16.msra.mxu1 %v1205_v7 }
 0x3c1   :  { %1138 = vmatprep.subr.bf16.mxu1 %v1444_v0 }
 0x3c4   :  { %1139 = vmatpush3.bf16.msra.mxu1 %v1206_v8 }
 0x3c5   :  { %1140 = vmatprep.subr.bf16.mxu1 %v1444_v0  ;;  %v802_v0 = vsub.f32 1.0, %v1693_v47 }
 0x3c7   :  { %v807_v22 = vrot.slane %v802_v0, %v1696_v49 }
 0x3c8   :  { %1141 = vmatpush3.bf16.msra.mxu1 %v1207_v16 }
 0x47e   :  { %v653_v54 = vpop.f32.mrb[4].mxu1 }
 0x47f   :  { %v654_v55 = vadd.f32 %v947_v53, %v653_v54  ;;  %v1104_v56 = vpop.f32.mrb[5].mxu1 }
 0x480   :  { %v656_v57 = vpop.f32.mrb[6].mxu1 }
 0x481   :  { %v1105_v58 = vpop.f32.mrb[7].mxu1  ;;  %v667_v59 = vsel %vm666_vm8, %v654_v55, -1e+30 }
 0x482   :  { %668 = vmax.xlane.f32.xlu0 %v667_v59 }
 0x50f   :  { %v669_v9 = vpop.xlane.xlu0 %668 }
 0x510   :  { %v670_v10 = vsub.f32 %v654_v55, %v669_v9 }
 0x512   :  { %v671_v11 = vmul.f32 1.442695, %v670_v10 }
 0x514   :  { %1220 = vpow2.f32 %v671_v11 }
 0x51e   :  { %v1221_v13 = vpop.eup %1220 }
 0x51f   :  { %v679_v14 = vmul.f32 %v1221_v13, %v677_v12 }
 0x521   :  { %v680_v15 = vpack.c.bf16 %v679_v14, %v679_v14 }
 0x523   :  { %1123 = vmatmul.mubr.bf16.vlgmr.msra.gmra.mrb[8].mxu0 %v680_v15 }
 0x5f6   :  { %v779_v17 = vpop.f32.mrb[8].mxu0 }
 0x5f7   :  { %v785_v18 = vpack.c.bf16 %v779_v17, %v779_v17  ;;  %v1124_v19 = vpop.f32.mrb[9].mxu0 }
 0x5f8   :  { %v782_v20 = vpop.f32.mrb[10].mxu0 }
 0x5f9   :  { %v1125_v21 = vpop.f32.mrb[11].mxu0  ;;  %1143 = vmatmul.mubr.bf16.vlgmr.msra.gmra.mrb[8].mxu1 %v785_v18 }
 0x6cc   :  { %v891_v23 = vpop.f32.mrb[8].mxu1 }
 0x6cd   :  { %v892_v24 = vadd.f32 %v891_v23, %v807_v22  ;;  %v1144_v25 = vpop.f32.mrb[9].mxu1 }
 0x6ce   :  { %v894_v26 = vpop.f32.mrb[10].mxu1 }
 0x6cf   :  { %v897_v27 = vadd.f32 1e-30, %v892_v24  ;;  %v1145_v28 = vpop.f32.mrb[11].mxu1 }
 0x6d1   :  { %1222 = vrcp.f32 %v897_v27 }
 0x6db   :  { %v1223_v29 = vpop.eup %1222 }
 0x6dc   :  { %v899_v30 = vmul.f32 %v1223_v29, %v679_v14 }
 0x6de   :  { %900 = vst [vmem:[#allocation16] sm:$0xff] %v899_v30 }
 0x6df   :  { %1411 = shalt.err (!%p1408_p12)
}
 0x6e0   :  { %s1412_s20 = scalar_lea.hbm %s1742_s13, 128 }
 0x6e1   :  { %p1413_p13 = scmp.ne.s32.totalorder %s1742_s13, %s1412_s20  ;;  %p1416_p0 = scmp.lt.u32.totalorder %s1412_s20, %s1742_s13 }
 0x6e3   :  { %p1418_p1 = pnand %p1416_p0, %p1413_p13 }
 0x6e5   :  { %1421 = shalt.err (!%p1418_p1)
}
 0x6e6   :  { %910 = dma.vmem_to_hbm [thread:$0]  %s908_s10, 128, %s1742_s13, [#allocation4]  }
 0x6e7   :  { %1432 = dma.done.wait [#allocation4], 128  }
 0x6e8   :  { %1433 = vsyncadd [#allocation4], 4294967168 }
 0x6e9   :  { %914 = vsyncpa [#allocation3], 1 }
 0x6ea   :  { %915 = vsyncpa [#allocation6], 1 }
 0x6eb   :  { %916 = vsyncpa [#allocation9], 1 }
 0x6ec   :  { %917 = vsyncpa [#allocation12], 1 }
 0x6ed   :  { %918 = vsyncpa [#allocation15], 1 }
 0x6ee   :  { %919 = vsyncpa [#allocation4], 1 }

// kernel: tpu_custom_call.1
= control target key start
LH: loop header
LB: loop body
LE: loop exit
PB: predicated region body
PF: predicated region fallthrough
CT: control target
= control target key end

     0   :  { %18 = vsyncpa [#allocation3], 0  ;;  %s1729_s0 = inlined_call_operand.hbm [shape: bf16[8,128], index: 0, kind: input, shape index: {}]   ;;  %s1730_s1 = inlined_call_operand.hbm [shape: f32[8,384], index: 1, kind: input, shape index: {}]   ;;  %s1731_s2 = inlined_call_operand.hbm [shape: bf16[128,128], index: 2, kind: input, shape index: {}]   ;;  %s1732_s3 = inlined_call_operand.vmem [shape: f32[1,128], index: 3, kind: input, shape index: {}]   ;;  %s1733_s4 = inlined_call_operand.hbm [shape: bf16[128,128], index: 4, kind: input, shape index: {}]   ;;  %s1734_s5 = inlined_call_operand.vmem [shape: f32[1,128], index: 5, kind: input, shape index: {}]   ;;  %s1735_s6 = inlined_call_operand.hbm [shape: bf16[128,128], index: 6, kind: input, shape index: {}]   ;;  %s1736_s7 = inlined_call_operand.vmem [shape: f32[1,128], index: 7, kind: input, shape index: {}]   ;;  %s1737_s8 = inlined_call_operand.hbm [shape: bf16[128,128], index: 8, kind: input, shape index: {}]   ;;  %s1738_s9 = inlined_call_operand.vmem [shape: f32[1,128], index: 9, kind: input, shape index: {}]   ;;  %s1739_s10 = inlined_call_operand.vmem [shape: f32[1,128], index: 10, kind: input, shape index: {}]   ;;  %s1740_s11 = inlined_call_operand.hbm [shape: bf16[128,128], index: 11, kind: input, shape index: {}]   ;;  %s1741_s12 = inlined_call_operand.hbm [shape: bf16[128,128], index: 12, kind: input, shape index: {}]   ;;  %s1742_s13 = inlined_call_operand.hbm [shape: f32[8,128], index: 13, kind: output, shape index: {}]  }
   0x1   :  { %19 = vsyncpa [#allocation6], 0 }
   0x2   :  { %20 = vsyncpa [#allocation9], 0 }
   0x3   :  { %21 = vsyncpa [#allocation12], 0 }
   0x4   :  { %22 = vsyncpa [#allocation15], 0 }
   0x5   :  { %23 = vsyncpa [#allocation4], 0  ;;  %s1434_s25 = smov [#allocation5]   ;;  %s1224_s29 = scalar_lea.hbm %s1730_s1, 384 }
   0x6   :  { %s40_s26 = sshll.u32 %s1434_s25, 4  ;;  %p1225_p0 = scmp.ne.s32.totalorder %s1730_s1, %s1224_s29  ;;  %s41_s26 = int_to_ptr.vmem [resolvable:$true] %s40_s26 }
   0x7   :  { %p1228_p1 = scmp.lt.u32.totalorder %s1224_s29, %s1730_s1 }
   0x9   :  { %p1230_p2 = pnand %p1228_p1, %p1225_p0 }
   0xb   :  { %1233 = shalt.err (!%p1230_p2)
}
   0xc   :  { %s1234_s17 = scalar_lea.vmem %s41_s26, 384  ;;  %p1239_p4 = scmp.lt.s32.totalorder %s41_s26, %s41_s26 }
   0xd   :  { %p1235_p3 = scmp.ne.s32.totalorder %s41_s26, %s1234_s17  ;;  %p1240_p5 = scmp.lt.s32.totalorder %s1234_s17, %s1234_s17 }
   0xf   :  { %p1241_p6 = por %p1240_p5, %p1239_p4 }
  0x11   :  { %p1242_p7 = pnand %p1241_p6, %p1235_p3 }
  0x13   :  { %1245 = shalt.err (!%p1242_p7)
}
  0x14   :  { %43 = dma.hbm_to_vmem [thread:$0]  %s1730_s1, 384, %s41_s26, [#allocation6]  }
  0x15   :  { %s1435_s20 = smov [#allocation8]   ;;  %s1436_s22 = smov [#allocation11]  }
  0x16   :  { %s63_s21 = sshll.u32 %s1435_s20, 4  ;;  %s91_s23 = sshll.u32 %s1436_s22, 4  ;;  %s64_s21 = int_to_ptr.vmem [resolvable:$true] %s63_s21  ;;  %s92_s23 = int_to_ptr.vmem [resolvable:$true] %s91_s23 }
  0x17   :  { %s1246_s27 = scalar_lea.hbm %s1733_s4, 1024 }
  0x18   :  { %p1247_p8 = scmp.ne.s32.totalorder %s1733_s4, %s1246_s27  ;;  %p1250_p9 = scmp.lt.u32.totalorder %s1246_s27, %s1733_s4 }
  0x1a   :  { %p1252_p10 = pnand %p1250_p9, %p1247_p8 }
  0x1c   :  { %1255 = shalt.err (!%p1252_p10)
}
  0x1d   :  { %s1256_s1 = scalar_lea.vmem %s64_s21, 1024  ;;  %p1261_p12 = scmp.lt.s32.totalorder %s64_s21, %s64_s21 }
  0x1e   :  { %p1257_p11 = scmp.ne.s32.totalorder %s64_s21, %s1256_s1  ;;  %p1262_p13 = scmp.lt.s32.totalorder %s1256_s1, %s1256_s1 }
  0x20   :  { %p1263_p0 = por %p1262_p13, %p1261_p12 }
  0x22   :  { %p1264_p1 = pnand %p1263_p0, %p1257_p11 }
  0x24   :  { %1267 = shalt.err (!%p1264_p1)
}
  0x25   :  { %s1437_s26 = smov 64   ;;  %s1438_s15 = smov 4  }
  0x26   :  { %69 = dma.hbm_to_vmem [thread:$0]  %s1733_s4, 1024, %s64_s21, [#allocation9], %s1437_s26, %s1437_s26, %s1438_s15  }
  0x27   :  { %s1268_s20 = scalar_lea.hbm %s1737_s8, 1024 }
  0x28   :  { %p1269_p2 = scmp.ne.s32.totalorder %s1737_s8, %s1268_s20  ;;  %p1272_p3 = scmp.lt.u32.totalorder %s1268_s20, %s1737_s8 }
  0x2a   :  { %p1274_p4 = pnand %p1272_p3, %p1269_p2 }
  0x2c   :  { %1277 = shalt.err (!%p1274_p4)
}
  0x2d   :  { %s1278_s28 = scalar_lea.vmem %s92_s23, 1024  ;;  %p1283_p6 = scmp.lt.s32.totalorder %s92_s23, %s92_s23 }
  0x2e   :  { %p1279_p5 = scmp.ne.s32.totalorder %s92_s23, %s1278_s28  ;;  %p1284_p7 = scmp.lt.s32.totalorder %s1278_s28, %s1278_s28 }
  0x30   :  { %p1285_p8 = por %p1284_p7, %p1283_p6 }
  0x32   :  { %p1286_p9 = pnand %p1285_p8, %p1279_p5 }
  0x34   :  { %1289 = shalt.err (!%p1286_p9)
}
  0x35   :  { %97 = dma.hbm_to_vmem [thread:$0]  %s1737_s8, 1024, %s92_s23, [#allocation12], %s1437_s26, %s1437_s26, %s1438_s15  }
  0x36   :  { %s1439_s29 = smov [#allocation2]   ;;  %s1440_s14 = smov [#allocation7]  }
  0x37   :  { %s30_s30 = sshll.u32 %s1439_s29, 4  ;;  %s49_s1 = sshll.u32 %s1440_s14, 4  ;;  %s31_s30 = int_to_ptr.vmem [resolvable:$true] %s30_s30  ;;  %s50_s1 = int_to_ptr.vmem [resolvable:$true] %s49_s1 }
  0x38   :  { %s1290_s18 = scalar_lea.hbm %s1729_s0, 64 }
  0x39   :  { %p1291_p10 = scmp.ne.s32.totalorder %s1729_s0, %s1290_s18  ;;  %p1294_p11 = scmp.lt.u32.totalorder %s1290_s18, %s1729_s0 }
  0x3b   :  { %p1296_p12 = pnand %p1294_p11, %p1291_p10 }
  0x3d   :  { %1299 = shalt.err (!%p1296_p12)
}
  0x3e   :  { %s1300_s8 = scalar_lea.vmem %s31_s30, 64  ;;  %p1305_p0 = scmp.lt.s32.totalorder %s31_s30, %s31_s30 }
  0x3f   :  { %p1301_p13 = scmp.ne.s32.totalorder %s31_s30, %s1300_s8  ;;  %p1306_p1 = scmp.lt.s32.totalorder %s1300_s8, %s1300_s8 }
  0x41   :  { %p1307_p2 = por %p1306_p1, %p1305_p0 }
  0x43   :  { %p1308_p3 = pnand %p1307_p2, %p1301_p13 }
  0x45   :  { %1311 = shalt.err (!%p1308_p3)
}
  0x46   :  { %33 = dma.hbm_to_vmem [thread:$0]  %s1729_s0, 64, %s31_s30, [#allocation3]  }
  0x47   :  { %s1312_s4 = scalar_lea.hbm %s1731_s2, 1024 }
  0x48   :  { %p1313_p4 = scmp.ne.s32.totalorder %s1731_s2, %s1312_s4  ;;  %p1316_p5 = scmp.lt.u32.totalorder %s1312_s4, %s1731_s2 }
  0x4a   :  { %p1318_p6 = pnand %p1316_p5, %p1313_p4 }
  0x4c   :  { %1321 = shalt.err (!%p1318_p6)
}
  0x4d   :  { %s1322_s17 = scalar_lea.vmem %s50_s1, 1024  ;;  %p1327_p8 = scmp.lt.s32.totalorder %s50_s1, %s50_s1 }
  0x4e   :  { %p1323_p7 = scmp.ne.s32.totalorder %s50_s1, %s1322_s17  ;;  %p1328_p9 = scmp.lt.s32.totalorder %s1322_s17, %s1322_s17 }
  0x50   :  { %p1329_p10 = por %p1328_p9, %p1327_p8 }
  0x52   :  { %p1330_p11 = pnand %p1329_p10, %p1323_p7 }
  0x54   :  { %1333 = shalt.err (!%p1330_p11)
}
  0x55   :  { %55 = dma.hbm_to_vmem [thread:$0]  %s1731_s2, 1024, %s50_s1, [#allocation6], %s1437_s26, %s1437_s26, %s1438_s15  }
  0x56   :  { %s1441_s18 = smov [#allocation10]   ;;  %s1442_s20 = smov [#allocation13]  }
  0x57   :  { %s77_s19 = sshll.u32 %s1441_s18, 4  ;;  %s107_s22 = sshll.u32 %s1442_s20, 4  ;;  %s78_s19 = int_to_ptr.vmem [resolvable:$true] %s77_s19  ;;  %s108_s22 = int_to_ptr.vmem [resolvable:$true] %s107_s22 }
  0x58   :  { %s1334_s23 = scalar_lea.hbm %s1735_s6, 1024 }
  0x59   :  { %p1335_p12 = scmp.ne.s32.totalorder %s1735_s6, %s1334_s23  ;;  %p1338_p13 = scmp.lt.u32.totalorder %s1334_s23, %s1735_s6 }
  0x5b   :  { %p1340_p0 = pnand %p1338_p13, %p1335_p12 }
  0x5d   :  { %1343 = shalt.err (!%p1340_p0)
}
  0x5e   :  { %s1344_s2 = scalar_lea.vmem %s78_s19, 1024  ;;  %p1349_p2 = scmp.lt.s32.totalorder %s78_s19, %s78_s19 }
  0x5f   :  { %p1345_p1 = scmp.ne.s32.totalorder %s78_s19, %s1344_s2  ;;  %p1350_p3 = scmp.lt.s32.totalorder %s1344_s2, %s1344_s2 }
  0x61   :  { %p1351_p4 = por %p1350_p3, %p1349_p2 }
  0x63   :  { %p1352_p5 = pnand %p1351_p4, %p1345_p1 }
  0x65   :  { %1355 = shalt.err (!%p1352_p5)
}
  0x66   :  { %83 = dma.hbm_to_vmem [thread:$0]  %s1735_s6, 1024, %s78_s19, [#allocation9], %s1437_s26, %s1437_s26, %s1438_s15  }
  0x67   :  { %s1356_s16 = scalar_lea.hbm %s1740_s11, 1024 }
  0x68   :  { %p1357_p6 = scmp.ne.s32.totalorder %s1740_s11, %s1356_s16  ;;  %p1360_p7 = scmp.lt.u32.totalorder %s1356_s16, %s1740_s11 }
  0x6a   :  { %p1362_p8 = pnand %p1360_p7, %p1357_p6 }
  0x6c   :  { %1365 = shalt.err (!%p1362_p8)
}
  0x6d   :  { %s1366_s20 = scalar_lea.vmem %s108_s22, 1024  ;;  %p1371_p10 = scmp.lt.s32.totalorder %s108_s22, %s108_s22 }
  0x6e   :  { %p1367_p9 = scmp.ne.s32.totalorder %s108_s22, %s1366_s20  ;;  %p1372_p11 = scmp.lt.s32.totalorder %s1366_s20, %s1366_s20 }
  0x70   :  { %p1373_p12 = por %p1372_p11, %p1371_p10 }
  0x72   :  { %p1374_p13 = pnand %p1373_p12, %p1367_p9 }
  0x74   :  { %1377 = shalt.err (!%p1374_p13)
}
  0x75   :  { %113 = dma.hbm_to_vmem [thread:$0]  %s1740_s11, 1024, %s108_s22, [#allocation12], %s1437_s26, %s1437_s26, %s1438_s15  }
  0x76   :  { %s1443_s24 = smov [#allocation14]   ;;  %s1378_s27 = scalar_lea.hbm %s1741_s12, 1024 }
  0x77   :  { %s119_s8 = sshll.u32 %s1443_s24, 4  ;;  %p1379_p0 = scmp.ne.s32.totalorder %s1741_s12, %s1378_s27  ;;  %s120_s8 = int_to_ptr.vmem [resolvable:$true] %s119_s8 }
  0x78   :  { %p1382_p1 = scmp.lt.u32.totalorder %s1378_s27, %s1741_s12 }
  0x7a   :  { %p1384_p2 = pnand %p1382_p1, %p1379_p0 }
  0x7c   :  { %1387 = shalt.err (!%p1384_p2)
}
  0x7d   :  { %s1388_s21 = scalar_lea.vmem %s120_s8, 1024  ;;  %p1393_p4 = scmp.lt.s32.totalorder %s120_s8, %s120_s8 }
  0x7e   :  { %p1389_p3 = scmp.ne.s32.totalorder %s120_s8, %s1388_s21  ;;  %p1394_p5 = scmp.lt.s32.totalorder %s1388_s21, %s1388_s21 }
  0x80   :  { %p1395_p6 = por %p1394_p5, %p1393_p4 }
  0x82   :  { %p1396_p7 = pnand %p1395_p6, %p1389_p3 }
  0x84   :  { %1399 = shalt.err (!%p1396_p7)
}
  0x85   :  { %125 = dma.hbm_to_vmem [thread:$0]  %s1741_s12, 1024, %s120_s8, [#allocation15], %s1437_s26, %s1437_s26, %s1438_s15  }
  0x86   :  { %1422 = dma.done.wait [#allocation3], 64  }
  0x87   :  { %1423 = vsyncadd [#allocation3], 4294967232 }
  0x88   :  { %1424 = dma.done.wait [#allocation6], 1408  }
  0x89   :  { %1425 = vsyncadd [#allocation6], 4294965888 }
  0x8a   :  { %1426 = dma.done.wait [#allocation9], 2048  }
  0x8b   :  { %1427 = vsyncadd [#allocation9], 4294965248 }
  0x8c   :  { %1428 = dma.done.wait [#allocation12], 2048  }
  0x8d   :  { %1429 = vsyncadd [#allocation12], 4294965248 }
  0x8e   :  { %1430 = dma.done.wait [#allocation15], 1024  }
  0x8f   :  { %1431 = vsyncadd [#allocation15], 4294966272  ;;  %v1444_v0 = vmov 0.0   ;;  %vm1445_vm0 = vmmov 0   ;;  %v1160_v1 = vld [vmem:[#allocation7] sm:$0xff]   ;;  %v1161_v2 = vld [vmem:[#allocation7 + $0x8] sm:$0xff]  }
  0x90   :  { %1026 = vmatprep.subr.bf16.mxu0 %v1444_v0  ;;  %1042 = vmatprep.mubr.msk.bf16.mxu0 %vm1445_vm0, %v1444_v0  ;;  %v1162_v3 = vld [vmem:[#allocation7 + $0x10] sm:$0xff]   ;;  %v1163_v4 = vld [vmem:[#allocation7 + $0x18] sm:$0xff]   ;;  %v1164_v5 = vld [vmem:[#allocation7 + $0x20] sm:$0xff]  }
  0x91   :  { %1046 = vmatprep.subr.bf16.mxu1 %v1444_v0  ;;  %1062 = vmatprep.mubr.msk.bf16.mxu1 %vm1445_vm0, %v1444_v0  ;;  %v1165_v6 = vld [vmem:[#allocation7 + $0x28] sm:$0xff]   ;;  %v1166_v7 = vld [vmem:[#allocation7 + $0x30] sm:$0xff]   ;;  %v1167_v8 = vld [vmem:[#allocation7 + $0x38] sm:$0xff]  }
  0x92   :  { %1027 = vmatpush3.bf16.msra.mxu0 %v1160_v1  ;;  %v151_v9 = vld [vmem:[#allocation2] sm:$0xf]  ;;  %v1169_v11 = vld [vmem:[#allocation8 + $0x8] sm:$0xff]   ;;  %v1170_v12 = vld [vmem:[#allocation8 + $0x10] sm:$0xff]  }
  0x93   :  { %1028 = vmatprep.subr.bf16.mxu0 %v1444_v0  ;;  %v1168_v10 = vld [vmem:[#allocation8] sm:$0xff]   ;;  %v1171_v13 = vld [vmem:[#allocation8 + $0x18] sm:$0xff]   ;;  %v1173_v15 = vld [vmem:[#allocation8 + $0x28] sm:$0xff]  }
  0x94   :  { %1047 = vmatpush3.bf16.msra.mxu1 %v1168_v10  ;;  %v1172_v14 = vld [vmem:[#allocation8 + $0x20] sm:$0xff]   ;;  %v1174_v16 = vld [vmem:[#allocation8 + $0x30] sm:$0xff]   ;;  %v1175_v17 = vld [vmem:[#allocation8 + $0x38] sm:$0xff]  }
  0x95   :  { %1048 = vmatprep.subr.bf16.mxu1 %v1444_v0  ;;  %v920_v18 = vld [vmem:[%s1732_s3] ss:$0 sm:$0xff]  ;;  %v152_v19 = vld [vmem:[#allocation5] sm:$0xff]  ;;  %v1178_v44 = vld [vmem:[#allocation10 + $0x10] sm:$0xff]  }
  0x96   :  { %1029 = vmatpush3.bf16.msra.mxu0 %v1161_v2  ;;  %v1176_v42 = vld [vmem:[#allocation10] sm:$0xff]   ;;  %v1177_v43 = vld [vmem:[#allocation10 + $0x8] sm:$0xff]   ;;  %v1179_v45 = vld [vmem:[#allocation10 + $0x18] sm:$0xff]  }
  0x97   :  { %1030 = vmatprep.subr.bf16.mxu0 %v1444_v0  ;;  %v1180_v46 = vld [vmem:[#allocation10 + $0x20] sm:$0xff]   ;;  %v1181_v47 = vld [vmem:[#allocation10 + $0x28] sm:$0xff]   ;;  %v1182_v48 = vld [vmem:[#allocation10 + $0x30] sm:$0xff]  }
  0x98   :  { %1049 = vmatpush3.bf16.msra.mxu1 %v1169_v11  ;;  %v1183_v49 = vld [vmem:[#allocation10 + $0x38] sm:$0xff]   ;;  %v929_v50 = vld [vmem:[%s1734_s5] ss:$0 sm:$0xff]  ;;  %v153_v51 = vld [vmem:[#allocation5 + $0x8] sm:$0xff] }
  0x99   :  { %1050 = vmatprep.subr.bf16.mxu1 %v1444_v0  ;;  %v1184_v11 = vld [vmem:[#allocation11] sm:$0xff]  }
  0x9a   :  { %1031 = vmatpush3.bf16.msra.mxu0 %v1162_v3 }
  0x9b   :  { %1032 = vmatprep.subr.bf16.mxu0 %v1444_v0 }
  0x9c   :  { %1051 = vmatpush3.bf16.msra.mxu1 %v1170_v12  ;;  %v1185_v12 = vld [vmem:[#allocation11 + $0x8] sm:$0xff]  }
  0x9d   :  { %1052 = vmatprep.subr.bf16.mxu1 %v1444_v0 }
  0x9e   :  { %1033 = vmatpush3.bf16.msra.mxu0 %v1163_v4 }
  0x9f   :  { %1034 = vmatprep.subr.bf16.mxu0 %v1444_v0 }
  0xa0   :  { %1053 = vmatpush3.bf16.msra.mxu1 %v1171_v13  ;;  %v1186_v13 = vld [vmem:[#allocation11 + $0x10] sm:$0xff]  }
  0xa1   :  { %1054 = vmatprep.subr.bf16.mxu1 %v1444_v0 }
  0xa2   :  { %1035 = vmatpush3.bf16.msra.mxu0 %v1164_v5 }
  0xa3   :  { %1036 = vmatprep.subr.bf16.mxu0 %v1444_v0 }
  0xa4   :  { %1055 = vmatpush3.bf16.msra.mxu1 %v1172_v14  ;;  %v1187_v14 = vld [vmem:[#allocation11 + $0x18] sm:$0xff]  }
  0xa5   :  { %1056 = vmatprep.subr.bf16.mxu1 %v1444_v0 }
  0xa6   :  { %1037 = vmatpush3.bf16.msra.mxu0 %v1165_v6 }
  0xa7   :  { %1038 = vmatprep.subr.bf16.mxu0 %v1444_v0 }
  0xa8   :  { %1057 = vmatpush3.bf16.msra.mxu1 %v1173_v15  ;;  %v1188_v15 = vld [vmem:[#allocation11 + $0x20] sm:$0xff]  }
  0xa9   :  { %1058 = vmatprep.subr.bf16.mxu1 %v1444_v0 }
  0xaa   :  { %1039 = vmatpush3.bf16.msra.mxu0 %v1166_v7 }
  0xab   :  { %1040 = vmatprep.subr.bf16.mxu0 %v1444_v0 }
  0xac   :  { %1059 = vmatpush3.bf16.msra.mxu1 %v1174_v16  ;;  %v1189_v16 = vld [vmem:[#allocation11 + $0x28] sm:$0xff]  }
  0xad   :  { %1060 = vmatprep.subr.bf16.mxu1 %v1444_v0 }
  0xae   :  { %1041 = vmatpush3.bf16.msra.mxu0 %v1167_v8 }
  0xaf   :  { %1066 = vmatprep.subr.bf16.mxu0 %v1444_v0 }
  0xb0   :  { %1061 = vmatpush3.bf16.msra.mxu1 %v1175_v17  ;;  %v1190_v17 = vld [vmem:[#allocation11 + $0x30] sm:$0xff]  }
  0xb1   :  { %1043 = vmatmul.mubr.bf16.vlgmr.msra.gmra.mrb[0].mxu0 %v151_v9  ;;  %1086 = vmatprep.subr.bf16.mxu1 %v1444_v0 }
  0xb2   :  { %1082 = vmatprep.mubr.msk.bf16.mxu0 %vm1445_vm0, %v1444_v0  ;;  %1067 = vmatpush3.bf16.msra.mxu0 %v1176_v42 }
  0xb3   :  { %1068 = vmatprep.subr.bf16.mxu0 %v1444_v0 }
  0xb6   :  { %1069 = vmatpush3.bf16.msra.mxu0 %v1177_v43  ;;  %v1192_v43 = vld [vmem:[#allocation13] sm:$0xff]  }
  0xb7   :  { %1070 = vmatprep.subr.bf16.mxu0 %v1444_v0 }
  0xba   :  { %1071 = vmatpush3.bf16.msra.mxu0 %v1178_v44  ;;  %v1193_v44 = vld [vmem:[#allocation13 + $0x8] sm:$0xff]  }
  0xbb   :  { %1072 = vmatprep.subr.bf16.mxu0 %v1444_v0 }
  0xbe   :  { %1073 = vmatpush3.bf16.msra.mxu0 %v1179_v45  ;;  %v1194_v45 = vld [vmem:[#allocation13 + $0x10] sm:$0xff]  }
  0xbf   :  { %1074 = vmatprep.subr.bf16.mxu0 %v1444_v0 }
  0xc2   :  { %1075 = vmatpush3.bf16.msra.mxu0 %v1180_v46  ;;  %v662_v46 = vlaneseq }
  0xc3   :  { %1076 = vmatprep.subr.bf16.mxu0 %v1444_v0 }
  0xc6   :  { %1077 = vmatpush3.bf16.msra.mxu0 %v1181_v47  ;;  %v1693_v47 = vld [vmem:[%s1739_s10] sm:$0x1] }
  0xc7   :  { %1078 = vmatprep.subr.bf16.mxu0 %v1444_v0  ;;  %vm660_vm7 = vcmp.gt.f32.partialorder %v1693_v47, 0.0 }
  0xca   :  { %1079 = vmatpush3.bf16.msra.mxu0 %v1182_v48  ;;  %v663_v48 = vshrl.u32 %v662_v46, 7 }
  0xcb   :  { %1080 = vmatprep.subr.bf16.mxu0 %v1444_v0 }
  0xce   :  { %1081 = vmatpush3.bf16.msra.mxu0 %v1183_v49  ;;  %v1696_v49 = vsub.s32 0, %v663_v48 }
  0xcf   :  { %1106 = vmatprep.subr.bf16.mxu0 %v1444_v0 }
 0x184   :  { %v260_v20 = vpop.f32.mrb[0].mxu0 }
 0x185   :  { %v261_v21 = vadd.f32 %v920_v18, %v260_v20  ;;  %v1044_v22 = vpop.f32.mrb[1].mxu0  ;;  %v1191_v18 = vld [vmem:[#allocation11 + $0x38] sm:$0xff]  }
 0x186   :  { %v263_v23 = vpop.f32.mrb[2].mxu0  ;;  %v154_v20 = vld [vmem:[#allocation5 + $0x10] sm:$0xff] }
 0x187   :  { %v266_v24 = vmul.f32 %v261_v21, %v152_v19  ;;  %v1045_v25 = vpop.f32.mrb[3].mxu0  ;;  %v938_v19 = vld [vmem:[%s1736_s7] ss:$0 sm:$0xff] }
 0x189   :  { %v270_v26 = vand.u32 2147483647, %v266_v24  ;;  %v267_v37 = vmax.f32 %v266_v24, 0.0  ;;  %vm268_vm2 = vcmp.ne.f32.partialorder %v266_v24, %v266_v24 }
 0x18b   :  { %v271_v27 = vsub.f32 0.0, %v270_v26 }
 0x18d   :  { %v272_v28 = vmul.f32 1.442695, %v271_v27 }
 0x18f   :  { %1208 = vpow2.f32 %v272_v28 }
 0x199   :  { %v1209_v29 = vpop.eup %1208 }
 0x19a   :  { %v274_v30 = vadd.f32 1.0, %v1209_v29  ;;  %v277_v31 = vmul.f32 -0.5, %v1209_v29  ;;  %v280_v33 = vand.u32 2147483647, %v1209_v29 }
 0x19c   :  { %1210 = vlog2.f32 %v274_v30  ;;  %v278_v32 = vadd.f32 1.0, %v277_v31  ;;  %vm281_vm1 = vcmp.lt.f32.partialorder %v280_v33, 0.0004427343 }
 0x19e   :  { %v279_v36 = vmul.f32 %v1209_v29, %v278_v32 }
 0x1a6   :  { %v1211_v34 = vpop.eup %1210 }
 0x1a7   :  { %v276_v35 = vmul.f32 0.6931472, %v1211_v34 }
 0x1a9   :  { %v282_v38 = vsel %vm281_vm1, %v279_v36, %v276_v35 }
 0x1aa   :  { %v283_v39 = vadd.f32 %v282_v38, %v267_v37 }
 0x1ac   :  { %v284_v40 = vsel %vm268_vm2, %v266_v24, %v283_v39 }
 0x1ad   :  { %v285_v41 = vpack.c.bf16 %v284_v40, %v284_v40 }
 0x1af   :  { %1063 = vmatmul.mubr.bf16.vlgmr.msra.gmra.mrb[0].mxu1 %v285_v41 }
 0x1b0   :  { %1102 = vmatprep.mubr.msk.bf16.mxu1 %vm1445_vm0, %v1444_v0  ;;  %1087 = vmatpush3.bf16.msra.mxu1 %v1184_v11 }
 0x1b1   :  { %1088 = vmatprep.subr.bf16.mxu1 %v1444_v0 }
 0x1b4   :  { %1089 = vmatpush3.bf16.msra.mxu1 %v1185_v12  ;;  %v677_v12 = vrot.slane %v1693_v47, %v1696_v49 }
 0x1b5   :  { %1090 = vmatprep.subr.bf16.mxu1 %v1444_v0 }
 0x1b8   :  { %1091 = vmatpush3.bf16.msra.mxu1 %v1186_v13 }
 0x1b9   :  { %1092 = vmatprep.subr.bf16.mxu1 %v1444_v0 }
 0x1bc   :  { %1093 = vmatpush3.bf16.msra.mxu1 %v1187_v14 }
 0x1bd   :  { %1094 = vmatprep.subr.bf16.mxu1 %v1444_v0 }
 0x1c0   :  { %1095 = vmatpush3.bf16.msra.mxu1 %v1188_v15 }
 0x1c1   :  { %1096 = vmatprep.subr.bf16.mxu1 %v1444_v0 }
 0x1c4   :  { %1097 = vmatpush3.bf16.msra.mxu1 %v1189_v16  ;;  %v1207_v16 = vld [vmem:[#allocation14 + $0x38] sm:$0xff]  }
 0x1c5   :  { %1098 = vmatprep.subr.bf16.mxu1 %v1444_v0 }
 0x1c8   :  { %1099 = vmatpush3.bf16.msra.mxu1 %v1190_v17 }
 0x1c9   :  { %1100 = vmatprep.subr.bf16.mxu1 %v1444_v0 }
 0x1cc   :  { %1101 = vmatpush3.bf16.msra.mxu1 %v1191_v18 }
 0x1cd   :  { %1126 = vmatprep.subr.bf16.mxu1 %v1444_v0 }
 0x282   :  { %v391_v52 = vpop.f32.mrb[0].mxu1 }
 0x283   :  { %v392_v53 = vadd.f32 %v929_v50, %v391_v52  ;;  %v1064_v54 = vpop.f32.mrb[1].mxu1  ;;  %v1446_v50 = vmov 0  }
 0x284   :  { %v394_v55 = vpop.f32.mrb[2].mxu1 }
 0x285   :  { %v397_v56 = vmul.f32 %v392_v53, %v153_v51  ;;  %v1065_v57 = vpop.f32.mrb[3].mxu1  ;;  %v661_v51 = vsel %vm660_vm7, 1, %v1446_v50  ;;  %v947_v53 = vld [vmem:[%s1738_s9] ss:$0 sm:$0xff]  ;;  %s1447_s9 = smov [#allocation16]  }
 0x286   :  { %v665_v52 = vrot.slane %v661_v51, %v1696_v49  ;;  %s907_s10 = sshll.u32 %s1447_s9, 4  ;;  %s908_s10 = int_to_ptr.vmem [resolvable:$true] %s907_s10 }
 0x287   :  { %v401_v58 = vand.u32 2147483647, %v397_v56  ;;  %v398_v6 = vmax.f32 %v397_v56, 0.0  ;;  %vm399_vm4 = vcmp.ne.f32.partialorder %v397_v56, %v397_v56  ;;  %s1400_s0 = scalar_lea.vmem %s908_s10, 128  ;;  %p1405_p9 = scmp.lt.s32.totalorder %s908_s10, %s908_s10 }
 0x288   :  { %vm666_vm8 = vcmp.eq.s32.totalorder %v665_v52, 1  ;;  %p1401_p8 = scmp.ne.s32.totalorder %s908_s10, %s1400_s0  ;;  %p1406_p10 = scmp.lt.s32.totalorder %s1400_s0, %s1400_s0 }
 0x289   :  { %v402_v59 = vsub.f32 0.0, %v401_v58 }
 0x28a   :  { %p1407_p11 = por %p1406_p10, %p1405_p9 }
 0x28b   :  { %v403_v60 = vmul.f32 1.442695, %v402_v59 }
 0x28c   :  { %p1408_p12 = pnand %p1407_p11, %p1401_p8 }
 0x28d   :  { %1212 = vpow2.f32 %v403_v60  ;;  %v1195_v60 = vld [vmem:[#allocation13 + $0x18] sm:$0xff]  }
 0x297   :  { %v1213_v61 = vpop.eup %1212 }
 0x298   :  { %v405_v62 = vadd.f32 1.0, %v1213_v61  ;;  %v408_v63 = vmul.f32 -0.5, %v1213_v61  ;;  %v411_v2 = vand.u32 2147483647, %v1213_v61 }
 0x29a   :  { %1214 = vlog2.f32 %v405_v62  ;;  %v409_v1 = vadd.f32 1.0, %v408_v63  ;;  %vm412_vm3 = vcmp.lt.f32.partialorder %v411_v2, 0.0004427343  ;;  %v1197_v62 = vld [vmem:[#allocation13 + $0x28] sm:$0xff]   ;;  %v1198_v63 = vld [vmem:[#allocation13 + $0x30] sm:$0xff]   ;;  %v1200_v2 = vld [vmem:[#allocation14] sm:$0xff]  }
 0x29c   :  { %v410_v5 = vmul.f32 %v1213_v61, %v409_v1  ;;  %v1196_v61 = vld [vmem:[#allocation13 + $0x20] sm:$0xff]   ;;  %v1199_v1 = vld [vmem:[#allocation13 + $0x38] sm:$0xff]  }
 0x2a4   :  { %v1215_v3 = vpop.eup %1214 }
 0x2a5   :  { %v407_v4 = vmul.f32 0.6931472, %v1215_v3  ;;  %v1201_v3 = vld [vmem:[#allocation14 + $0x8] sm:$0xff]  }
 0x2a7   :  { %v413_v7 = vsel %vm412_vm3, %v410_v5, %v407_v4  ;;  %v1202_v4 = vld [vmem:[#allocation14 + $0x10] sm:$0xff]   ;;  %v1203_v5 = vld [vmem:[#allocation14 + $0x18] sm:$0xff]  }
 0x2a8   :  { %v414_v8 = vadd.f32 %v413_v7, %v398_v6  ;;  %v1204_v6 = vld [vmem:[#allocation14 + $0x20] sm:$0xff]   ;;  %v1205_v7 = vld [vmem:[#allocation14 + $0x28] sm:$0xff]  }
 0x2aa   :  { %v415_v9 = vsel %vm399_vm4, %v397_v56, %v414_v8  ;;  %v1206_v8 = vld [vmem:[#allocation14 + $0x30] sm:$0xff]  }
 0x2ab   :  { %v416_v10 = vpack.c.bf16 %v415_v9, %v415_v9 }
 0x2ad   :  { %1083 = vmatmul.mubr.bf16.vlgmr.msra.gmra.mrb[4].mxu0 %v416_v10 }
 0x2ae   :  { %1122 = vmatprep.mubr.msk.bf16.mxu0 %vm1445_vm0, %v1444_v0  ;;  %1107 = vmatpush3.bf16.msra.mxu0 %v1192_v43 }
 0x2af   :  { %1108 = vmatprep.subr.bf16.mxu0 %v1444_v0 }
 0x2b2   :  { %1109 = vmatpush3.bf16.msra.mxu0 %v1193_v44 }
 0x2b3   :  { %1110 = vmatprep.subr.bf16.mxu0 %v1444_v0 }
 0x2b6   :  { %1111 = vmatpush3.bf16.msra.mxu0 %v1194_v45 }
 0x2b7   :  { %1112 = vmatprep.subr.bf16.mxu0 %v1444_v0 }
 0x2ba   :  { %1113 = vmatpush3.bf16.msra.mxu0 %v1195_v60 }
 0x2bb   :  { %1114 = vmatprep.subr.bf16.mxu0 %v1444_v0 }
 0x2be   :  { %1115 = vmatpush3.bf16.msra.mxu0 %v1196_v61 }
 0x2bf   :  { %1116 = vmatprep.subr.bf16.mxu0 %v1444_v0 }
 0x2c2   :  { %1117 = vmatpush3.bf16.msra.mxu0 %v1197_v62 }
 0x2c3   :  { %1118 = vmatprep.subr.bf16.mxu0 %v1444_v0 }
 0x2c6   :  { %1119 = vmatpush3.bf16.msra.mxu0 %v1198_v63 }
 0x2c7   :  { %1120 = vmatprep.subr.bf16.mxu0 %v1444_v0 }
 0x2ca   :  { %1121 = vmatpush3.bf16.msra.mxu0 %v1199_v1 }
 0x380   :  { %v522_v21 = vpop.f32.mrb[4].mxu0 }
 0x381   :  { %v523_v22 = vadd.f32 %v938_v19, %v522_v21  ;;  %v1084_v23 = vpop.f32.mrb[5].mxu0 }
 0x382   :  { %v525_v24 = vpop.f32.mrb[6].mxu0 }
 0x383   :  { %v528_v25 = vmul.f32 %v523_v22, %v154_v20  ;;  %v1085_v26 = vpop.f32.mrb[7].mxu0 }
 0x385   :  { %v532_v27 = vand.u32 2147483647, %v528_v25  ;;  %v529_v38 = vmax.f32 %v528_v25, 0.0  ;;  %vm530_vm6 = vcmp.ne.f32.partialorder %v528_v25, %v528_v25 }
 0x387   :  { %v533_v28 = vsub.f32 0.0, %v532_v27 }
 0x389   :  { %v534_v29 = vmul.f32 1.442695, %v533_v28 }
 0x38b   :  { %1216 = vpow2.f32 %v534_v29 }
 0x395   :  { %v1217_v30 = vpop.eup %1216 }
 0x396   :  { %v536_v31 = vadd.f32 1.0, %v1217_v30  ;;  %v539_v32 = vmul.f32 -0.5, %v1217_v30  ;;  %v542_v34 = vand.u32 2147483647, %v1217_v30 }
 0x398   :  { %1218 = vlog2.f32 %v536_v31  ;;  %v540_v33 = vadd.f32 1.0, %v539_v32  ;;  %vm543_vm5 = vcmp.lt.f32.partialorder %v542_v34, 0.0004427343 }
 0x39a   :  { %v541_v37 = vmul.f32 %v1217_v30, %v540_v33 }
 0x3a2   :  { %v1219_v35 = vpop.eup %1218 }
 0x3a3   :  { %v538_v36 = vmul.f32 0.6931472, %v1219_v35 }
 0x3a5   :  { %v544_v39 = vsel %vm543_vm5, %v541_v37, %v538_v36 }
 0x3a6   :  { %v545_v40 = vadd.f32 %v544_v39, %v529_v38 }
 0x3a8   :  { %v546_v41 = vsel %vm530_vm6, %v528_v25, %v545_v40 }
 0x3a9   :  { %v547_v42 = vpack.c.bf16 %v546_v41, %v546_v41 }
 0x3ab   :  { %1103 = vmatmul.mubr.bf16.vlgmr.msra.gmra.mrb[4].mxu1 %v547_v42 }
 0x3ac   :  { %1142 = vmatprep.mubr.msk.bf16.mxu1 %vm1445_vm0, %v1444_v0  ;;  %1127 = vmatpush3.bf16.msra.mxu1 %v1200_v2 }
 0x3ad   :  { %1128 = vmatprep.subr.bf16.mxu1 %v1444_v0 }
 0x3b0   :  { %1129 = vmatpush3.bf16.msra.mxu1 %v1201_v3 }
 0x3b1   :  { %1130 = vmatprep.subr.bf16.mxu1 %v1444_v0 }
 0x3b4   :  { %1131 = vmatpush3.bf16.msra.mxu1 %v1202_v4 }
 0x3b5   :  { %1132 = vmatprep.subr.bf16.mxu1 %v1444_v0 }
 0x3b8   :  { %1133 = vmatpush3.bf16.msra.mxu1 %v1203_v5 }
 0x3b9   :  { %1134 = vmatprep.subr.bf16.mxu1 %v1444_v0 }
 0x3bc   :  { %1135 = vmatpush3.bf16.msra.mxu1 %v1204_v6 }
 0x3bd   :  { %1136 = vmatprep.subr.bf16.mxu1 %v1444_v0 }
 0x3c0   :  { %1137 = vmatpush3.bf16.msra.mxu1 %v1205_v7 }
 0x3c1   :  { %1138 = vmatprep.subr.bf16.mxu1 %v1444_v0 }
 0x3c4   :  { %1139 = vmatpush3.bf16.msra.mxu1 %v1206_v8 }
 0x3c5   :  { %1140 = vmatprep.subr.bf16.mxu1 %v1444_v0  ;;  %v802_v0 = vsub.f32 1.0, %v1693_v47 }
 0x3c7   :  { %v807_v22 = vrot.slane %v802_v0, %v1696_v49 }
 0x3c8   :  { %1141 = vmatpush3.bf16.msra.mxu1 %v1207_v16 }
 0x47e   :  { %v653_v54 = vpop.f32.mrb[4].mxu1 }
 0x47f   :  { %v654_v55 = vadd.f32 %v947_v53, %v653_v54  ;;  %v1104_v56 = vpop.f32.mrb[5].mxu1 }
 0x480   :  { %v656_v57 = vpop.f32.mrb[6].mxu1 }
 0x481   :  { %v1105_v58 = vpop.f32.mrb[7].mxu1  ;;  %v667_v59 = vsel %vm666_vm8, %v654_v55, -1e+30 }
 0x482   :  { %668 = vmax.xlane.f32.xlu0 %v667_v59 }
 0x50f   :  { %v669_v9 = vpop.xlane.xlu0 %668 }
 0x510   :  { %v670_v10 = vsub.f32 %v654_v55, %v669_v9 }
 0x512   :  { %v671_v11 = vmul.f32 1.442695, %v670_v10 }
 0x514   :  { %1220 = vpow2.f32 %v671_v11 }
 0x51e   :  { %v1221_v13 = vpop.eup %1220 }
 0x51f   :  { %v679_v14 = vmul.f32 %v1221_v13, %v677_v12 }
 0x521   :  { %v680_v15 = vpack.c.bf16 %v679_v14, %v679_v14 }
 0x523   :  { %1123 = vmatmul.mubr.bf16.vlgmr.msra.gmra.mrb[8].mxu0 %v680_v15 }
 0x5f6   :  { %v779_v17 = vpop.f32.mrb[8].mxu0 }
 0x5f7   :  { %v785_v18 = vpack.c.bf16 %v779_v17, %v779_v17  ;;  %v1124_v19 = vpop.f32.mrb[9].mxu0 }
 0x5f8   :  { %v782_v20 = vpop.f32.mrb[10].mxu0 }
 0x5f9   :  { %v1125_v21 = vpop.f32.mrb[11].mxu0  ;;  %1143 = vmatmul.mubr.bf16.vlgmr.msra.gmra.mrb[8].mxu1 %v785_v18 }
 0x6cc   :  { %v891_v23 = vpop.f32.mrb[8].mxu1 }
 0x6cd   :  { %v892_v24 = vadd.f32 %v891_v23, %v807_v22  ;;  %v1144_v25 = vpop.f32.mrb[9].mxu1 }
 0x6ce   :  { %v894_v26 = vpop.f32.mrb[10].mxu1 }
 0x6cf   :  { %v897_v27 = vadd.f32 1e-30, %v892_v24  ;;  %v1145_v28 = vpop.f32.mrb[11].mxu1 }
 0x6d1   :  { %1222 = vrcp.f32 %v897_v27 }
 0x6db   :  { %v1223_v29 = vpop.eup %1222 }
 0x6dc   :  { %v899_v30 = vmul.f32 %v1223_v29, %v679_v14 }
 0x6de   :  { %900 = vst [vmem:[#allocation16] sm:$0xff] %v899_v30 }
 0x6df   :  { %1411 = shalt.err (!%p1408_p12)
}
 0x6e0   :  { %s1412_s20 = scalar_lea.hbm %s1742_s13, 128 }
 0x6e1   :  { %p1413_p13 = scmp.ne.s32.totalorder %s1742_s13, %s1412_s20  ;;  %p1416_p0 = scmp.lt.u32.totalorder %s1412_s20, %s1742_s13 }
 0x6e3   :  { %p1418_p1 = pnand %p1416_p0, %p1413_p13 }
 0x6e5   :  { %1421 = shalt.err (!%p1418_p1)
}
 0x6e6   :  { %910 = dma.vmem_to_hbm [thread:$0]  %s908_s10, 128, %s1742_s13, [#allocation4]  }
 0x6e7   :  { %1432 = dma.done.wait [#allocation4], 128  }
 0x6e8   :  { %1433 = vsyncadd [#allocation4], 4294967168 }
 0x6e9   :  { %914 = vsyncpa [#allocation3], 1 }
 0x6ea   :  { %915 = vsyncpa [#allocation6], 1 }
 0x6eb   :  { %916 = vsyncpa [#allocation9], 1 }
 0x6ec   :  { %917 = vsyncpa [#allocation12], 1 }
 0x6ed   :  { %918 = vsyncpa [#allocation15], 1 }
 0x6ee   :  { %919 = vsyncpa [#allocation4], 1 }

</bundles_post_ra>
